<compile_context>
chip_gen: v6e
topology: v6e:2x2x1
jax: 0.10.0
libtpu: 0.0.40
codegen_flags: <defaults>
</compile_context>

<pallas_src>
import math
import functools

import jax
import jax.numpy as jnp
import numpy as np
from jax.experimental import pallas as pl
from jax.experimental.pallas import tpu as pltpu


# ----------------------------- configuration --------------------------------
B = 2          # batch
C_IN = 16      # input / output channels
C = 16         # conv1 output channels
G = 2          # groups
H = W = 16     # spatial
K = 8          # number of EM bases
STAGE_NUM = 2  # EM iterations
KERNEL_SIZE = 1

N = H * W          # flattened spatial
CG = C // G        # channels per group after conv1
CG_IN = C_IN // G  # channels per group at input


def _tensorcores_per_chip():
    """Best-effort TensorCores-per-chip detection (v7x: 2, v5e/v6e: 1)."""
    try:
        kind = jax.devices()[0].device_kind.lower()
    except Exception:
        return 1
    return 2 if ("v7" in kind or "tpu7" in kind) else 1


# ------------------------------- Pallas kernel ------------------------------
def _emau_kernel(x_ref, w1_ref, b1_ref, w2_ref, b2_ref, mu_ref, o_ref,
                 *, bb, g, cg, cg_in, n, stage_num):
    """Processes `bb` batch elements per grid step.

    x_ref : [bb, g*cg_in, n]   input (channels x flattened spatial)
    w1_ref: [g*cg, g*cg_in]    conv1 as a block-diagonal dense matrix
    b1_ref: [g*cg, 1]          conv1 bias
    w2_ref: [g*cg_in, g*cg]    conv2 as a block-diagonal dense matrix
    b2_ref: [g*cg_in, 1]       conv2 bias
    mu_ref: [cg, k]            EM bases (shared init)
    o_ref : [bb, g*cg_in, n]   output
    """
    # Hoist invariant parameter loads out of the unrolled batch loop.
    w1 = w1_ref[...]                                          # [g*cg, g*cg_in]
    b1 = b1_ref[...]                                          # [g*cg, 1]
    w2 = w2_ref[...]                                          # [g*cg_in, g*cg]
    b2 = b2_ref[...]                                          # [g*cg_in, 1]
    mu0 = mu_ref[...]                                         # [cg, k]

    for bi in range(bb):
        xb = x_ref[bi]                                        # [g*cg_in, n]

        # ---- conv1: single block-diagonal MXU call -> [g*cg, n] ------------
        y = jnp.dot(w1, xb, preferred_element_type=jnp.float32) + b1

        # In-register re-layout of per-group row blocks into the lane-dense EM
        # slab xe [cg, g*n]; lane offsets are multiples of n (tile-aligned),
        # so this is layout-only (no VMEM scratch roundtrip).
        xe = jnp.concatenate(
            [y[gi * cg:(gi + 1) * cg, :] for gi in range(g)], axis=1)

        # ---- EM attention (torch.no_grad block), z kept lane-dense ---------
        mu = mu0
        z = None
        for _ in range(stage_num):
            # z = softmax_k(mu^T @ xe): [k, g*n], softmax along sublane axis 0.
            z = jax.lax.dot_general(mu, xe, (((0,), (0,)), ((), ())),
                                    preferred_element_type=jnp.float32)
            z = jnp.exp(z - jnp.max(z, axis=0, keepdims=True))
            z = z / jnp.sum(z, axis=0, keepdims=True)
            # z_ = z / (1e-6 + sum over spatial); spatial is the lane axis 1.
            z_ = z / (1e-6 + jnp.sum(z, axis=1, keepdims=True))
            # mu = l2norm_channel(xe @ z_^T): [cg, k]; matches torch _l2norm:
            # mu / (1e-6 + ||mu||_2).
            mu = jax.lax.dot_general(xe, z_, (((1,), (1,)), ((), ())),
                                     preferred_element_type=jnp.float32)
            mu = mu / (1e-6 + jnp.sqrt(jnp.sum(mu * mu, axis=0, keepdims=True)))

        # ---- reconstruct: relu(mu @ z) -> [cg, g*n]; de-interleave group ---
        # column blocks back into channel row blocks -> rec [g*cg, n].
        x_rec = jnp.maximum(
            jnp.dot(mu, z, preferred_element_type=jnp.float32), 0.0)
        rec = jnp.concatenate(
            [x_rec[:, gi * n:(gi + 1) * n] for gi in range(g)], axis=0)

        # ---- conv2 (block-diagonal) + bias + residual + relu ----------------
        og = jnp.dot(w2, rec, preferred_element_type=jnp.float32) + b2 + xb
        o_ref[bi] = jnp.maximum(og, 0.0)                      # one [C, N] store


# --------------------------------- wrapper -----------------------------------
def emau_pallas(x_nchw, w1_g, b1, w2_g, b2, mu0):
    """x_nchw: [B, C_IN, H, W] float32 -> [B, C_IN, H, W] float32."""
    b = x_nchw.shape[0]
    x_flat = x_nchw.reshape(b, C_IN, N)

    # Fuse both grouped 1x1 convs into block-diagonal dense matrices.
    w1_bd = jax.scipy.linalg.block_diag(*[w1_g[i] for i in range(G)])  # [C, C_IN]
    w2_bd = jax.scipy.linalg.block_diag(*[w2_g[i] for i in range(G)])  # [C_IN, C]
    b1_col = b1.reshape(C, 1)
    b2_col = b2.reshape(C_IN, 1)

    n_tc = _tensorcores_per_chip()
    if n_tc > 1 and b % n_tc == 0:
        # v7x: 2 TensorCores -> one batch element per (parallel) grid step.
        # (At B=2 this is roughly neutral vs. the collapsed path below; kept
        #  because the split never loses more than the duplicated tiny DMAs.)
        grid, bb = (b,), 1
        blk_map = lambda i: (i, 0, 0)
        dim_sem = ("parallel",)
    else:
        # v5e/v6e: single TC -> collapse the grid, loop the batch in-kernel so
        # the two independent batch chains interleave on the MXU.
        grid, bb = (1,), b
        blk_map = lambda i: (0, 0, 0)
        dim_sem = ("arbitrary",)

    kernel = functools.partial(_emau_kernel, bb=bb, g=G, cg=CG, cg_in=CG_IN,
                               n=N, stage_num=STAGE_NUM)

    out = pl.pallas_call(
        kernel,
        out_shape=jax.ShapeDtypeStruct((b, C_IN, N), jnp.float32),
        grid_spec=pltpu.PrefetchScalarGridSpec(
            num_scalar_prefetch=0,
            grid=grid,
            in_specs=[
                pl.BlockSpec((bb, C_IN, N), blk_map),
                pl.BlockSpec((C, C_IN),     lambda i: (0, 0)),
                pl.BlockSpec((C, 1),        lambda i: (0, 0)),
                pl.BlockSpec((C_IN, C),     lambda i: (0, 0)),
                pl.BlockSpec((C_IN, 1),     lambda i: (0, 0)),
                pl.BlockSpec((CG, K),       lambda i: (0, 0)),
            ],
            out_specs=pl.BlockSpec((bb, C_IN, N), blk_map),
        ),
        compiler_params=pltpu.CompilerParams(dimension_semantics=dim_sem),
    )(x_flat, w1_bd, b1_col, w2_bd, b2_col, mu0)

    return out.reshape(b, C_IN, H, W)


# ---------------------------- pure-JAX reference -----------------------------
def emau_ref(x_nchw, w1_g, b1, w2_g, b2, mu0):
    b = x_nchw.shape[0]
    xg = x_nchw.reshape(b, G, CG_IN, N)
    b1_g = b1.reshape(G, CG, 1)
    b2_g = b2.reshape(G, CG_IN, 1)
    y = jnp.einsum('goc,bgcn->bgon', w1_g, xg) + b1_g[None]           # [b,G,CG,N]
    xe = jnp.transpose(y, (0, 2, 1, 3)).reshape(b, CG, G * N)
    mu = jnp.broadcast_to(mu0[None], (b, CG, K))
    z = None
    for _ in range(STAGE_NUM):
        z = jnp.einsum('bcn,bck->bnk', xe, mu)
        z = jax.nn.softmax(z, axis=2)
        z_ = z / (1e-6 + jnp.sum(z, axis=1, keepdims=True))
        mu = jnp.einsum('bcn,bnk->bck', xe, z_)
        mu = mu / (1e-6 + jnp.linalg.norm(mu, axis=1, keepdims=True))
    xr = jnp.einsum('bck,bnk->bcn', mu, z)
    xr = xr.reshape(b, CG, G, N).transpose(0, 2, 1, 3)                # [b,G,CG,N]
    xr = jnp.maximum(xr, 0.0)
    out = jnp.einsum('goc,bgcn->bgon', w2_g, xr) + b2_g[None]
    out = jnp.maximum(out + xg, 0.0)
    return out.reshape(b, C_IN, H, W)


# ------------------------------------ main -----------------------------------
if __name__ == "__main__":
    key = jax.random.PRNGKey(0)
    k_mu, k_w1, k_b1, k_w2, k_b2, k_x = jax.random.split(key, 6)

    # mu buffer: normal(0, sqrt(2/k)), l2-normalized over the channel dim
    mu = jax.random.normal(k_mu, (1, CG, K), dtype=jnp.float32) * math.sqrt(2.0 / K)
    mu = mu / (1e-6 + jnp.linalg.norm(mu, axis=1, keepdims=True))
    mu0 = mu[0]                                                       # [CG, K]

    # conv weights: normal(0, sqrt(2 / (kh*kw*out_channels))), kernel_size = 1
    w1 = jax.random.normal(k_w1, (C, CG_IN), dtype=jnp.float32) * math.sqrt(
        2.0 / (KERNEL_SIZE * KERNEL_SIZE * C))
    w2 = jax.random.normal(k_w2, (C_IN, CG), dtype=jnp.float32) * math.sqrt(
        2.0 / (KERNEL_SIZE * KERNEL_SIZE * C_IN))
    b1 = jax.random.normal(k_b1, (C,), dtype=jnp.float32) * 0.01
    b2 = jax.random.normal(k_b2, (C_IN,), dtype=jnp.float32) * 0.01

    # grouped views (PyTorch grouped-conv weight layout: [out, in/groups])
    w1_g = w1.reshape(G, CG, CG_IN)
    w2_g = w2.reshape(G, CG_IN, CG)

    x = jax.random.normal(k_x, (B, C_IN, H, W), dtype=jnp.float32)

    out = emau_pallas(x, w1_g, b1, w2_g, b2, mu0)
    out = jax.block_until_ready(out)

    ref = jax.block_until_ready(emau_ref(x, w1_g, b1, w2_g, b2, mu0))
    np.testing.assert_allclose(np.asarray(out), np.asarray(ref), atol=2e-3, rtol=2e-3)

    print("KERNEL_OK")
</pallas_src>

<mosaic_0001>
module attributes {stable_mosaic.version = 11 : i64} {
  func.func @_emau_kernel(%arg0: i32, %arg1: memref<2x16x256xf32, #tpu.memory_space<vmem>>, %arg2: memref<16x16xf32, #tpu.memory_space<vmem>>, %arg3: memref<16x1xf32, #tpu.memory_space<vmem>>, %arg4: memref<16x16xf32, #tpu.memory_space<vmem>>, %arg5: memref<16x1xf32, #tpu.memory_space<vmem>>, %arg6: memref<8x8xf32, #tpu.memory_space<vmem>>, %arg7: memref<2x16x256xf32, #tpu.memory_space<vmem>>) attributes {dimension_semantics = [#tpu.dimension_semantics<arbitrary>], iteration_bounds = array<i64: 1>, scalar_prefetch = 0 : i64, scratch_operands = 0 : i64, tpu.core_type = #tpu.core_type<tc>, window_params = [{pipeline_mode = #tpu.pipeline_mode<synchronous>, transform_indices = @transform_0, window_bounds = array<i64: 2, 16, 256>}, {pipeline_mode = #tpu.pipeline_mode<synchronous>, transform_indices = @transform_1, window_bounds = array<i64: 16, 16>}, {pipeline_mode = #tpu.pipeline_mode<synchronous>, transform_indices = @transform_2, window_bounds = array<i64: 16, 1>}, {pipeline_mode = #tpu.pipeline_mode<synchronous>, transform_indices = @transform_3, window_bounds = array<i64: 16, 16>}, {pipeline_mode = #tpu.pipeline_mode<synchronous>, transform_indices = @transform_4, window_bounds = array<i64: 16, 1>}, {pipeline_mode = #tpu.pipeline_mode<synchronous>, transform_indices = @transform_5, window_bounds = array<i64: 8, 8>}, {pipeline_mode = #tpu.pipeline_mode<synchronous>, transform_indices = @transform_6, window_bounds = array<i64: 2, 16, 256>}]} {
    %c0 = arith.constant 0 : index
    %c0_0 = arith.constant 0 : index
    %0 = vector.load %arg2[%c0, %c0_0] : memref<16x16xf32, #tpu.memory_space<vmem>>, vector<16x16xf32>
    %c0_1 = arith.constant 0 : index
    %c0_2 = arith.constant 0 : index
    %1 = vector.load %arg3[%c0_1, %c0_2] : memref<16x1xf32, #tpu.memory_space<vmem>>, vector<16x1xf32>
    %c0_3 = arith.constant 0 : index
    %c0_4 = arith.constant 0 : index
    %2 = vector.load %arg4[%c0_3, %c0_4] : memref<16x16xf32, #tpu.memory_space<vmem>>, vector<16x16xf32>
    %c0_5 = arith.constant 0 : index
    %c0_6 = arith.constant 0 : index
    %3 = vector.load %arg5[%c0_5, %c0_6] : memref<16x1xf32, #tpu.memory_space<vmem>>, vector<16x1xf32>
    %c0_7 = arith.constant 0 : index
    %c0_8 = arith.constant 0 : index
    %4 = vector.load %arg6[%c0_7, %c0_8] : memref<8x8xf32, #tpu.memory_space<vmem>>, vector<8x8xf32>
    %c0_9 = arith.constant 0 : index
    %c0_10 = arith.constant 0 : index
    %c0_11 = arith.constant 0 : index
    %5 = vector.load %arg1[%c0_9, %c0_10, %c0_11] : memref<2x16x256xf32, #tpu.memory_space<vmem>>, vector<1x16x256xf32>
    %6 = vector.shape_cast %5 : vector<1x16x256xf32> to vector<16x256xf32>
    %cst = arith.constant dense<0.000000e+00> : vector<16x256xf32>
    %7 = tpu.matmul %0, %6, %cst {dimension_numbers = #tpu.dot_dimension_numbers<[1], [0], [0], [1], [0, 0, 1, 1], [], []>} : vector<16x16xf32>, vector<16x256xf32>, vector<16x256xf32> -> vector<16x256xf32>
    %8 = vector.broadcast %1 : vector<16x1xf32> to vector<16x256xf32>
    %9 = arith.addf %7, %8 : vector<16x256xf32>
    %10 = vector.extract_strided_slice %9 {offsets = [0, 0], sizes = [8, 256], strides = [1, 1]} : vector<16x256xf32> to vector<8x256xf32>
    %11 = vector.extract_strided_slice %9 {offsets = [8, 0], sizes = [8, 256], strides = [1, 1]} : vector<16x256xf32> to vector<8x256xf32>
    %12 = tpu.concatenate %10, %11 in 1 : vector<8x256xf32>, vector<8x256xf32> -> vector<8x512xf32>
    %cst_12 = arith.constant dense<0.000000e+00> : vector<8x512xf32>
    %13 = tpu.matmul %4, %12, %cst_12 {dimension_numbers = #tpu.dot_dimension_numbers<[0], [0], [1], [1], [0, 1, 1, 1], [], []>} : vector<8x8xf32>, vector<8x512xf32>, vector<8x512xf32> -> vector<8x512xf32>
    %cst_13 = arith.constant dense<0xFF800000> : vector<512xf32>
    %14 = vector.multi_reduction <maximumf>, %13, %cst_13 [0] : vector<8x512xf32> to vector<512xf32>
    %15 = vector.shape_cast %14 : vector<512xf32> to vector<1x512xf32>
    %16 = vector.broadcast %15 : vector<1x512xf32> to vector<8x512xf32>
    %17 = arith.subf %13, %16 : vector<8x512xf32>
    %18 = math.exp %17 : vector<8x512xf32>
    %cst_14 = arith.constant dense<0.000000e+00> : vector<512xf32>
    %19 = vector.multi_reduction <add>, %18, %cst_14 [0] : vector<8x512xf32> to vector<512xf32>
    %20 = vector.shape_cast %19 : vector<512xf32> to vector<1x512xf32>
    %21 = vector.broadcast %20 : vector<1x512xf32> to vector<8x512xf32>
    %22 = arith.divf %18, %21 : vector<8x512xf32>
    %cst_15 = arith.constant dense<0.000000e+00> : vector<8xf32>
    %23 = vector.multi_reduction <add>, %22, %cst_15 [1] : vector<8x512xf32> to vector<8xf32>
    %24 = vector.shape_cast %23 : vector<8xf32> to vector<8x1xf32>
    %cst_16 = arith.constant 9.99999997E-7 : f32
    %25 = vector.broadcast %cst_16 : f32 to vector<8x1xf32>
    %26 = arith.addf %25, %24 : vector<8x1xf32>
    %27 = vector.broadcast %26 : vector<8x1xf32> to vector<8x512xf32>
    %28 = arith.divf %22, %27 : vector<8x512xf32>
    %cst_17 = arith.constant dense<0.000000e+00> : vector<8x8xf32>
    %29 = tpu.matmul %12, %28, %cst_17 {dimension_numbers = #tpu.dot_dimension_numbers<[1], [1], [0], [0], [0, 0, 1, 0], [], []>} : vector<8x512xf32>, vector<8x512xf32>, vector<8x8xf32> -> vector<8x8xf32>
    %30 = arith.mulf %29, %29 : vector<8x8xf32>
    %cst_18 = arith.constant dense<0.000000e+00> : vector<8xf32>
    %31 = vector.multi_reduction <add>, %30, %cst_18 [0] : vector<8x8xf32> to vector<8xf32>
    %32 = vector.shape_cast %31 : vector<8xf32> to vector<1x8xf32>
    %33 = math.sqrt %32 : vector<1x8xf32>
    %cst_19 = arith.constant 9.99999997E-7 : f32
    %34 = vector.broadcast %cst_19 : f32 to vector<1x8xf32>
    %35 = arith.addf %34, %33 : vector<1x8xf32>
    %36 = vector.broadcast %35 : vector<1x8xf32> to vector<8x8xf32>
    %37 = arith.divf %29, %36 : vector<8x8xf32>
    %cst_20 = arith.constant dense<0.000000e+00> : vector<8x512xf32>
    %38 = tpu.matmul %37, %12, %cst_20 {dimension_numbers = #tpu.dot_dimension_numbers<[0], [0], [1], [1], [0, 1, 1, 1], [], []>} : vector<8x8xf32>, vector<8x512xf32>, vector<8x512xf32> -> vector<8x512xf32>
    %cst_21 = arith.constant dense<0xFF800000> : vector<512xf32>
    %39 = vector.multi_reduction <maximumf>, %38, %cst_21 [0] : vector<8x512xf32> to vector<512xf32>
    %40 = vector.shape_cast %39 : vector<512xf32> to vector<1x512xf32>
    %41 = vector.broadcast %40 : vector<1x512xf32> to vector<8x512xf32>
    %42 = arith.subf %38, %41 : vector<8x512xf32>
    %43 = math.exp %42 : vector<8x512xf32>
    %cst_22 = arith.constant dense<0.000000e+00> : vector<512xf32>
    %44 = vector.multi_reduction <add>, %43, %cst_22 [0] : vector<8x512xf32> to vector<512xf32>
    %45 = vector.shape_cast %44 : vector<512xf32> to vector<1x512xf32>
    %46 = vector.broadcast %45 : vector<1x512xf32> to vector<8x512xf32>
    %47 = arith.divf %43, %46 : vector<8x512xf32>
    %cst_23 = arith.constant dense<0.000000e+00> : vector<8xf32>
    %48 = vector.multi_reduction <add>, %47, %cst_23 [1] : vector<8x512xf32> to vector<8xf32>
    %49 = vector.shape_cast %48 : vector<8xf32> to vector<8x1xf32>
    %cst_24 = arith.constant 9.99999997E-7 : f32
    %50 = vector.broadcast %cst_24 : f32 to vector<8x1xf32>
    %51 = arith.addf %50, %49 : vector<8x1xf32>
    %52 = vector.broadcast %51 : vector<8x1xf32> to vector<8x512xf32>
    %53 = arith.divf %47, %52 : vector<8x512xf32>
    %cst_25 = arith.constant dense<0.000000e+00> : vector<8x8xf32>
    %54 = tpu.matmul %12, %53, %cst_25 {dimension_numbers = #tpu.dot_dimension_numbers<[1], [1], [0], [0], [0, 0, 1, 0], [], []>} : vector<8x512xf32>, vector<8x512xf32>, vector<8x8xf32> -> vector<8x8xf32>
    %55 = arith.mulf %54, %54 : vector<8x8xf32>
    %cst_26 = arith.constant dense<0.000000e+00> : vector<8xf32>
    %56 = vector.multi_reduction <add>, %55, %cst_26 [0] : vector<8x8xf32> to vector<8xf32>
    %57 = vector.shape_cast %56 : vector<8xf32> to vector<1x8xf32>
    %58 = math.sqrt %57 : vector<1x8xf32>
    %cst_27 = arith.constant 9.99999997E-7 : f32
    %59 = vector.broadcast %cst_27 : f32 to vector<1x8xf32>
    %60 = arith.addf %59, %58 : vector<1x8xf32>
    %61 = vector.broadcast %60 : vector<1x8xf32> to vector<8x8xf32>
    %62 = arith.divf %54, %61 : vector<8x8xf32>
    %cst_28 = arith.constant dense<0.000000e+00> : vector<8x512xf32>
    %63 = tpu.matmul %62, %47, %cst_28 {dimension_numbers = #tpu.dot_dimension_numbers<[1], [0], [0], [1], [0, 0, 1, 1], [], []>} : vector<8x8xf32>, vector<8x512xf32>, vector<8x512xf32> -> vector<8x512xf32>
    %cst_29 = arith.constant 0.000000e+00 : f32
    %64 = vector.broadcast %cst_29 : f32 to vector<8x512xf32>
    %65 = arith.maximumf %63, %64 : vector<8x512xf32>
    %66 = vector.extract_strided_slice %65 {offsets = [0, 0], sizes = [8, 256], strides = [1, 1]} : vector<8x512xf32> to vector<8x256xf32>
    %67 = vector.extract_strided_slice %65 {offsets = [0, 256], sizes = [8, 256], strides = [1, 1]} : vector<8x512xf32> to vector<8x256xf32>
    %68 = tpu.concatenate %66, %67 in 0 : vector<8x256xf32>, vector<8x256xf32> -> vector<16x256xf32>
    %cst_30 = arith.constant dense<0.000000e+00> : vector<16x256xf32>
    %69 = tpu.matmul %2, %68, %cst_30 {dimension_numbers = #tpu.dot_dimension_numbers<[1], [0], [0], [1], [0, 0, 1, 1], [], []>} : vector<16x16xf32>, vector<16x256xf32>, vector<16x256xf32> -> vector<16x256xf32>
    %70 = vector.broadcast %3 : vector<16x1xf32> to vector<16x256xf32>
    %71 = arith.addf %69, %70 : vector<16x256xf32>
    %72 = arith.addf %71, %6 : vector<16x256xf32>
    %cst_31 = arith.constant 0.000000e+00 : f32
    %73 = vector.broadcast %cst_31 : f32 to vector<16x256xf32>
    %74 = arith.maximumf %72, %73 : vector<16x256xf32>
    %c0_32 = arith.constant 0 : index
    %c0_33 = arith.constant 0 : index
    %c0_34 = arith.constant 0 : index
    %75 = vector.load %arg7[%c0_32, %c0_33, %c0_34] : memref<2x16x256xf32, #tpu.memory_space<vmem>>, vector<1x16x256xf32>
    %76 = vector.shape_cast %75 : vector<1x16x256xf32> to vector<16x256xf32>
    %77 = vector.shape_cast %74 : vector<16x256xf32> to vector<1x16x256xf32>
    tpu.vector_store %arg7[%c0_32, %c0_33, %c0_34], %77 {strides = array<i32>} : memref<2x16x256xf32, #tpu.memory_space<vmem>>, vector<1x16x256xf32>,
    %c1 = arith.constant 1 : index
    %c0_35 = arith.constant 0 : index
    %c0_36 = arith.constant 0 : index
    %78 = vector.load %arg1[%c1, %c0_35, %c0_36] : memref<2x16x256xf32, #tpu.memory_space<vmem>>, vector<1x16x256xf32>
    %79 = vector.shape_cast %78 : vector<1x16x256xf32> to vector<16x256xf32>
    %cst_37 = arith.constant dense<0.000000e+00> : vector<16x256xf32>
    %80 = tpu.matmul %0, %79, %cst_37 {dimension_numbers = #tpu.dot_dimension_numbers<[1], [0], [0], [1], [0, 0, 1, 1], [], []>} : vector<16x16xf32>, vector<16x256xf32>, vector<16x256xf32> -> vector<16x256xf32>
    %81 = vector.broadcast %1 : vector<16x1xf32> to vector<16x256xf32>
    %82 = arith.addf %80, %81 : vector<16x256xf32>
    %83 = vector.extract_strided_slice %82 {offsets = [0, 0], sizes = [8, 256], strides = [1, 1]} : vector<16x256xf32> to vector<8x256xf32>
    %84 = vector.extract_strided_slice %82 {offsets = [8, 0], sizes = [8, 256], strides = [1, 1]} : vector<16x256xf32> to vector<8x256xf32>
    %85 = tpu.concatenate %83, %84 in 1 : vector<8x256xf32>, vector<8x256xf32> -> vector<8x512xf32>
    %cst_38 = arith.constant dense<0.000000e+00> : vector<8x512xf32>
    %86 = tpu.matmul %4, %85, %cst_38 {dimension_numbers = #tpu.dot_dimension_numbers<[0], [0], [1], [1], [0, 1, 1, 1], [], []>} : vector<8x8xf32>, vector<8x512xf32>, vector<8x512xf32> -> vector<8x512xf32>
    %cst_39 = arith.constant dense<0xFF800000> : vector<512xf32>
    %87 = vector.multi_reduction <maximumf>, %86, %cst_39 [0] : vector<8x512xf32> to vector<512xf32>
    %88 = vector.shape_cast %87 : vector<512xf32> to vector<1x512xf32>
    %89 = vector.broadcast %88 : vector<1x512xf32> to vector<8x512xf32>
    %90 = arith.subf %86, %89 : vector<8x512xf32>
    %91 = math.exp %90 : vector<8x512xf32>
    %cst_40 = arith.constant dense<0.000000e+00> : vector<512xf32>
    %92 = vector.multi_reduction <add>, %91, %cst_40 [0] : vector<8x512xf32> to vector<512xf32>
    %93 = vector.shape_cast %92 : vector<512xf32> to vector<1x512xf32>
    %94 = vector.broadcast %93 : vector<1x512xf32> to vector<8x512xf32>
    %95 = arith.divf %91, %94 : vector<8x512xf32>
    %cst_41 = arith.constant dense<0.000000e+00> : vector<8xf32>
    %96 = vector.multi_reduction <add>, %95, %cst_41 [1] : vector<8x512xf32> to vector<8xf32>
    %97 = vector.shape_cast %96 : vector<8xf32> to vector<8x1xf32>
    %cst_42 = arith.constant 9.99999997E-7 : f32
    %98 = vector.broadcast %cst_42 : f32 to vector<8x1xf32>
    %99 = arith.addf %98, %97 : vector<8x1xf32>
    %100 = vector.broadcast %99 : vector<8x1xf32> to vector<8x512xf32>
    %101 = arith.divf %95, %100 : vector<8x512xf32>
    %cst_43 = arith.constant dense<0.000000e+00> : vector<8x8xf32>
    %102 = tpu.matmul %85, %101, %cst_43 {dimension_numbers = #tpu.dot_dimension_numbers<[1], [1], [0], [0], [0, 0, 1, 0], [], []>} : vector<8x512xf32>, vector<8x512xf32>, vector<8x8xf32> -> vector<8x8xf32>
    %103 = arith.mulf %102, %102 : vector<8x8xf32>
    %cst_44 = arith.constant dense<0.000000e+00> : vector<8xf32>
    %104 = vector.multi_reduction <add>, %103, %cst_44 [0] : vector<8x8xf32> to vector<8xf32>
    %105 = vector.shape_cast %104 : vector<8xf32> to vector<1x8xf32>
    %106 = math.sqrt %105 : vector<1x8xf32>
    %cst_45 = arith.constant 9.99999997E-7 : f32
    %107 = vector.broadcast %cst_45 : f32 to vector<1x8xf32>
    %108 = arith.addf %107, %106 : vector<1x8xf32>
    %109 = vector.broadcast %108 : vector<1x8xf32> to vector<8x8xf32>
    %110 = arith.divf %102, %109 : vector<8x8xf32>
    %cst_46 = arith.constant dense<0.000000e+00> : vector<8x512xf32>
    %111 = tpu.matmul %110, %85, %cst_46 {dimension_numbers = #tpu.dot_dimension_numbers<[0], [0], [1], [1], [0, 1, 1, 1], [], []>} : vector<8x8xf32>, vector<8x512xf32>, vector<8x512xf32> -> vector<8x512xf32>
    %cst_47 = arith.constant dense<0xFF800000> : vector<512xf32>
    %112 = vector.multi_reduction <maximumf>, %111, %cst_47 [0] : vector<8x512xf32> to vector<512xf32>
    %113 = vector.shape_cast %112 : vector<512xf32> to vector<1x512xf32>
    %114 = vector.broadcast %113 : vector<1x512xf32> to vector<8x512xf32>
    %115 = arith.subf %111, %114 : vector<8x512xf32>
    %116 = math.exp %115 : vector<8x512xf32>
    %cst_48 = arith.constant dense<0.000000e+00> : vector<512xf32>
    %117 = vector.multi_reduction <add>, %116, %cst_48 [0] : vector<8x512xf32> to vector<512xf32>
    %118 = vector.shape_cast %117 : vector<512xf32> to vector<1x512xf32>
    %119 = vector.broadcast %118 : vector<1x512xf32> to vector<8x512xf32>
    %120 = arith.divf %116, %119 : vector<8x512xf32>
    %cst_49 = arith.constant dense<0.000000e+00> : vector<8xf32>
    %121 = vector.multi_reduction <add>, %120, %cst_49 [1] : vector<8x512xf32> to vector<8xf32>
    %122 = vector.shape_cast %121 : vector<8xf32> to vector<8x1xf32>
    %cst_50 = arith.constant 9.99999997E-7 : f32
    %123 = vector.broadcast %cst_50 : f32 to vector<8x1xf32>
    %124 = arith.addf %123, %122 : vector<8x1xf32>
    %125 = vector.broadcast %124 : vector<8x1xf32> to vector<8x512xf32>
    %126 = arith.divf %120, %125 : vector<8x512xf32>
    %cst_51 = arith.constant dense<0.000000e+00> : vector<8x8xf32>
    %127 = tpu.matmul %85, %126, %cst_51 {dimension_numbers = #tpu.dot_dimension_numbers<[1], [1], [0], [0], [0, 0, 1, 0], [], []>} : vector<8x512xf32>, vector<8x512xf32>, vector<8x8xf32> -> vector<8x8xf32>
    %128 = arith.mulf %127, %127 : vector<8x8xf32>
    %cst_52 = arith.constant dense<0.000000e+00> : vector<8xf32>
    %129 = vector.multi_reduction <add>, %128, %cst_52 [0] : vector<8x8xf32> to vector<8xf32>
    %130 = vector.shape_cast %129 : vector<8xf32> to vector<1x8xf32>
    %131 = math.sqrt %130 : vector<1x8xf32>
    %cst_53 = arith.constant 9.99999997E-7 : f32
    %132 = vector.broadcast %cst_53 : f32 to vector<1x8xf32>
    %133 = arith.addf %132, %131 : vector<1x8xf32>
    %134 = vector.broadcast %133 : vector<1x8xf32> to vector<8x8xf32>
    %135 = arith.divf %127, %134 : vector<8x8xf32>
    %cst_54 = arith.constant dense<0.000000e+00> : vector<8x512xf32>
    %136 = tpu.matmul %135, %120, %cst_54 {dimension_numbers = #tpu.dot_dimension_numbers<[1], [0], [0], [1], [0, 0, 1, 1], [], []>} : vector<8x8xf32>, vector<8x512xf32>, vector<8x512xf32> -> vector<8x512xf32>
    %cst_55 = arith.constant 0.000000e+00 : f32
    %137 = vector.broadcast %cst_55 : f32 to vector<8x512xf32>
    %138 = arith.maximumf %136, %137 : vector<8x512xf32>
    %139 = vector.extract_strided_slice %138 {offsets = [0, 0], sizes = [8, 256], strides = [1, 1]} : vector<8x512xf32> to vector<8x256xf32>
    %140 = vector.extract_strided_slice %138 {offsets = [0, 256], sizes = [8, 256], strides = [1, 1]} : vector<8x512xf32> to vector<8x256xf32>
    %141 = tpu.concatenate %139, %140 in 0 : vector<8x256xf32>, vector<8x256xf32> -> vector<16x256xf32>
    %cst_56 = arith.constant dense<0.000000e+00> : vector<16x256xf32>
    %142 = tpu.matmul %2, %141, %cst_56 {dimension_numbers = #tpu.dot_dimension_numbers<[1], [0], [0], [1], [0, 0, 1, 1], [], []>} : vector<16x16xf32>, vector<16x256xf32>, vector<16x256xf32> -> vector<16x256xf32>
    %143 = vector.broadcast %3 : vector<16x1xf32> to vector<16x256xf32>
    %144 = arith.addf %142, %143 : vector<16x256xf32>
    %145 = arith.addf %144, %79 : vector<16x256xf32>
    %cst_57 = arith.constant 0.000000e+00 : f32
    %146 = vector.broadcast %cst_57 : f32 to vector<16x256xf32>
    %147 = arith.maximumf %145, %146 : vector<16x256xf32>
    %c1_58 = arith.constant 1 : index
    %c0_59 = arith.constant 0 : index
    %c0_60 = arith.constant 0 : index
    %148 = vector.load %arg7[%c1_58, %c0_59, %c0_60] : memref<2x16x256xf32, #tpu.memory_space<vmem>>, vector<1x16x256xf32>
    %149 = vector.shape_cast %148 : vector<1x16x256xf32> to vector<16x256xf32>
    %150 = vector.shape_cast %147 : vector<16x256xf32> to vector<1x16x256xf32>
    tpu.vector_store %arg7[%c1_58, %c0_59, %c0_60], %150 {strides = array<i32>} : memref<2x16x256xf32, #tpu.memory_space<vmem>>, vector<1x16x256xf32>,
    return
  }
  func.func @transform_0(%arg0: i32) -> (i32, i32, i32) {
    %c0_i32 = arith.constant 0 : i32
    %c0_i32_0 = arith.constant 0 : i32
    %c0_i32_1 = arith.constant 0 : i32
    %c0_i32_2 = arith.constant 0 : i32
    return %c0_i32, %c0_i32_0, %c0_i32_1 : i32, i32, i32
  }
  func.func @transform_1(%arg0: i32) -> (i32, i32) {
    %c0_i32 = arith.constant 0 : i32
    %c0_i32_0 = arith.constant 0 : i32
    %c0_i32_1 = arith.constant 0 : i32
    return %c0_i32, %c0_i32_0 : i32, i32
  }
  func.func @transform_2(%arg0: i32) -> (i32, i32) {
    %c0_i32 = arith.constant 0 : i32
    %c0_i32_0 = arith.constant 0 : i32
    %c0_i32_1 = arith.constant 0 : i32
    return %c0_i32, %c0_i32_0 : i32, i32
  }
  func.func @transform_3(%arg0: i32) -> (i32, i32) {
    %c0_i32 = arith.constant 0 : i32
    %c0_i32_0 = arith.constant 0 : i32
    %c0_i32_1 = arith.constant 0 : i32
    return %c0_i32, %c0_i32_0 : i32, i32
  }
  func.func @transform_4(%arg0: i32) -> (i32, i32) {
    %c0_i32 = arith.constant 0 : i32
    %c0_i32_0 = arith.constant 0 : i32
    %c0_i32_1 = arith.constant 0 : i32
    return %c0_i32, %c0_i32_0 : i32, i32
  }
  func.func @transform_5(%arg0: i32) -> (i32, i32) {
    %c0_i32 = arith.constant 0 : i32
    %c0_i32_0 = arith.constant 0 : i32
    %c0_i32_1 = arith.constant 0 : i32
    return %c0_i32, %c0_i32_0 : i32, i32
  }
  func.func @transform_6(%arg0: i32) -> (i32, i32, i32) {
    %c0_i32 = arith.constant 0 : i32
    %c0_i32_0 = arith.constant 0 : i32
    %c0_i32_1 = arith.constant 0 : i32
    %c0_i32_2 = arith.constant 0 : i32
    return %c0_i32, %c0_i32_0, %c0_i32_1 : i32, i32, i32
  }
}

</mosaic_0001>

<bundles_post_ra>
// kernel: tpu_custom_call.1
= control target key start
LH: loop header
LB: loop body
LE: loop exit
PB: predicated region body
PF: predicated region fallthrough
CT: control target
= control target key end

     0   :  { %11 = vsyncpa [#allocation3], 0  ;;  %s2777_s0 = inlined_call_operand.hbm [shape: f32[2,16,256], index: 0, kind: input, shape index: {}]   ;;  %s2778_s1 = inlined_call_operand.vmem [shape: f32[16,16], index: 1, kind: input, shape index: {}]   ;;  %s2779_s2 = inlined_call_operand.vmem [shape: f32[16,1], index: 2, kind: input, shape index: {}]   ;;  %s2780_s3 = inlined_call_operand.vmem [shape: f32[16,16], index: 3, kind: input, shape index: {}]   ;;  %s2781_s4 = inlined_call_operand.vmem [shape: f32[16,1], index: 4, kind: input, shape index: {}]   ;;  %s2782_s5 = inlined_call_operand.vmem [shape: f32[8,8], index: 5, kind: input, shape index: {}]   ;;  %s2783_s6 = inlined_call_operand.hbm [shape: f32[2,16,256], index: 6, kind: output, shape index: {}]  }
   0x1   :  { %12 = vsyncpa [#allocation4], 0  ;;  %s2521_s21 = smov [#allocation2]  }
   0x2   :  { %s18_s22 = sshll.u32 %s2521_s21, 4  ;;  %s19_s22 = int_to_ptr.vmem [resolvable:$true] %s18_s22 }
   0x3   :  { %s2485_s23 = scalar_lea.vmem %s19_s22, 1024  ;;  %p2490_p1 = scmp.lt.s32.totalorder %s19_s22, %s19_s22 }
   0x4   :  { %p2486_p0 = scmp.ne.s32.totalorder %s19_s22, %s2485_s23  ;;  %p2491_p2 = scmp.lt.s32.totalorder %s2485_s23, %s2485_s23 }
   0x6   :  { %p2492_p3 = por %p2491_p2, %p2490_p1 }
   0x8   :  { %p2493_p4 = pnand %p2492_p3, %p2486_p0 }
   0xa   :  { %2496 = shalt.err (!%p2493_p4)
}
   0xb   :  { %s2522_s24 = smov 256   ;;  %s2523_s25 = smov 16  }
   0xc   :  { %24 = dma.hbm_to_vmem [thread:$0]  %s2777_s0, 1024, %s19_s22, [#allocation3], %s2522_s24, %s2522_s24, %s2523_s25  }
   0xd   :  { %2517 = dma.done.wait [#allocation3], 1024  }
   0xe   :  { %2518 = vsyncadd [#allocation3], 4294966272  ;;  %v2524_v0 = vmov 0.0   ;;  %v2525_v1 = vmov 0   ;;  %v2571_v2 = vld [vmem:[#allocation2 + $0x18] sm:$0xff]  ;;  %v2573_v3 = vld [vmem:[#allocation2 + $0x10] sm:$0xff] }
   0xf   :  { %132 = vmatprep.mubr.f32.mxu0 %v2524_v0  ;;  %2385 = vset.pattern.permute.xlu0 %v2525_v1  ;;  %v48_v4 = vld [vmem:[#allocation2 + $0x8] sm:$0xff]  ;;  %v47_v5 = vld [vmem:[#allocation2] sm:$0xff]  ;;  %vm61_vm0 = vcmask 130048   ;;  %vm177_vm1 = vcmask 64512  }
  0x10   :  { %316 = vmatprep.mubr.f32.mxu1 %v2524_v0  ;;  %96 = vmatprep.subr.mxu0 %v2571_v2  ;;  %v2580_v6 = vld [vmem:[%s2778_s1] sm:$0xff]  ;;  %v41_v9 = vld [vmem:[%s2779_s2 + $0x8] sm:$0xff] }
  0x11   :  { %97 = vmatpush1.msra.mxu0 %v2573_v3  ;;  %v40_v7 = vld [vmem:[%s2779_s2] sm:$0xff]  ;;  %v2597_v10 = vld [vmem:[%s2778_s1 + $0x8] sm:$0xff] }
  0x12   :  { %v46_v8 = vld [vmem:[%s2782_s5] sm:$0xff]  ;;  %98 = vmatprep.subr.mxu0 %v48_v4  ;;  %53 = vperm.xlu0 %2385, %v40_v7  }
  0x13   :  { %99 = vmatpush1.msra.mxu0 %v47_v5  ;;  %145 = vxpose.xlu1.b32.start.end [1/1] (short) (narrow) %v46_v8, 8 }
  0x14   :  { %2359 = vmatmul.mubr.msk.f32.vlgmr.msra.gmra.mxu0 %vm61_vm0, %v2580_v6 }
  0x15   :  { %138 = vmatprep.mubr.f32.mxu0 %v2524_v0 }
  0x16   :  { %58 = vperm.xlu0 %2385, %v41_v9  }
  0x18   :  { %2360 = vmatmul.mubr.msk.f32.gmra.mxu0 %vm61_vm0, %v2597_v10 }
  0x19   :  { %245 = vmatprep.mubr.f32.mxu0 %v2524_v0 }
  0x8d   :  { %v2602_v11 = vpop.permute.xlu0 %53 }
  0x8f   :  { %v2610_v17 = vpop.trf.xlu1 }
  0x91   :  { %v2613_v18 = vpop.permute.xlu0 %58 }
  0xd4   :  { %v134_v12 = vpop.f32.mrf.mxu0 }
  0xd5   :  { %v2608_v15 = vadd.f32 %v134_v12, %v2602_v11 }
  0xd6   :  { %v136_v13 = vpop.f32.mrf.mxu0 }
  0xd7   :  { %v2605_v14 = vadd.f32 %v136_v13, %v2602_v11 }
  0xd8   :  { %v140_v16 = vpop.f32.mrf.mxu0 }
  0xd9   :  { %211 = vmatprep.subr.mxu0 %v2605_v14  ;;  %v2622_v21 = vadd.f32 %v140_v16, %v2613_v18 }
  0xda   :  { %v142_v19 = vpop.f32.mrf.mxu0  ;;  %212 = vmatpush1.msra.mxu0 %v2608_v15 }
  0xdb   :  { %v2617_v20 = vadd.f32 %v142_v19, %v2613_v18  ;;  %2361 = vmatmul.mubr.msk.f32.vlgmr.msra.gmra.mxu0 %vm177_vm1, %v2610_v17 }
  0xdd   :  { %282 = vmatprep.subr.mxu1 %v2617_v20  ;;  %536 = vmatprep.mubr.f32.mxu0 %v2617_v20 }
  0xde   :  { %283 = vmatpush1.msra.mxu1 %v2622_v21 }
  0xdf   :  { %2362 = vmatmul.mubr.msk.f32.vlgmr.msra.gmra.mxu1 %vm177_vm1, %v2610_v17 }
  0xe0   :  { %466 = vmatprep.mubr.f32.mxu1 %v2605_v14 }
 0x19b   :  { %v247_v22 = vpop.f32.mrf.mxu0 }
 0x19c   :  { %v323_v23 = vrot.slane %v247_v22, 4 }
 0x19d   :  { %v249_v24 = vpop.f32.mrf.mxu0 }
 0x19e   :  { %v324_v25 = vmax.f32 %v247_v22, %v323_v23  ;;  %v329_v26 = vrot.slane %v249_v24, 4 }
 0x19f   :  { %v318_v27 = vpop.f32.mrf.mxu1 }
 0x1a0   :  { %v325_v28 = vrot.slane %v324_v25, 2  ;;  %v330_v29 = vmax.f32 %v249_v24, %v329_v26  ;;  %v335_v30 = vrot.slane %v318_v27, 4 }
 0x1a1   :  { %v320_v31 = vpop.f32.mrf.mxu1 }
 0x1a2   :  { %v326_v32 = vmax.f32 %v324_v25, %v325_v28  ;;  %v331_v33 = vrot.slane %v330_v29, 2  ;;  %v336_v34 = vmax.f32 %v318_v27, %v335_v30  ;;  %v341_v35 = vrot.slane %v320_v31, 4 }
 0x1a4   :  { %v327_v36 = vrot.slane %v326_v32, 1  ;;  %v332_v37 = vmax.f32 %v330_v29, %v331_v33  ;;  %v337_v38 = vrot.slane %v336_v34, 2  ;;  %v342_v39 = vmax.f32 %v320_v31, %v341_v35 }
 0x1a6   :  { %v328_v40 = vmax.f32 %v326_v32, %v327_v36  ;;  %v333_v41 = vrot.slane %v332_v37, 1  ;;  %v338_v42 = vmax.f32 %v336_v34, %v337_v38  ;;  %v343_v43 = vrot.slane %v342_v39, 2 }
 0x1a8   :  { %v347_v44 = vsub.f32 %v247_v22, %v328_v40  ;;  %v334_v45 = vmax.f32 %v332_v37, %v333_v41  ;;  %v339_v46 = vrot.slane %v338_v42, 1  ;;  %v344_v47 = vmax.f32 %v342_v39, %v343_v43 }
 0x1aa   :  { %v351_v48 = vmul.f32 1.442695, %v347_v44  ;;  %v348_v49 = vsub.f32 %v249_v24, %v334_v45  ;;  %v340_v50 = vmax.f32 %v338_v42, %v339_v46  ;;  %v345_v51 = vrot.slane %v344_v47, 1 }
 0x1ac   :  { %2387 = vpow2.f32 %v351_v48  ;;  %v353_v52 = vmul.f32 1.442695, %v348_v49  ;;  %v349_v53 = vsub.f32 %v318_v27, %v340_v50  ;;  %v346_v54 = vmax.f32 %v344_v47, %v345_v51 }
 0x1ae   :  { %2389 = vpow2.f32 %v353_v52  ;;  %v355_v55 = vmul.f32 1.442695, %v349_v53  ;;  %v350_v56 = vsub.f32 %v320_v31, %v346_v54 }
 0x1b0   :  { %2391 = vpow2.f32 %v355_v55  ;;  %v357_v57 = vmul.f32 1.442695, %v350_v56 }
 0x1b2   :  { %2393 = vpow2.f32 %v357_v57 }
 0x1b9   :  { %v2388_v58 = vpop.eup %2387 }
 0x1ba   :  { %v359_v59 = vrot.slane %v2388_v58, 4 }
 0x1bb   :  { %v2390_v60 = vpop.eup %2389 }
 0x1bc   :  { %v360_v61 = vadd.f32 %v2388_v58, %v359_v59  ;;  %v365_v62 = vrot.slane %v2390_v60, 4 }
 0x1bd   :  { %v2392_v63 = vpop.eup %2391 }
 0x1be   :  { %v361_v4 = vrot.slane %v360_v61, 2  ;;  %v366_v5 = vadd.f32 %v2390_v60, %v365_v62  ;;  %v371_v7 = vrot.slane %v2392_v63, 4 }
 0x1bf   :  { %v2394_v8 = vpop.eup %2393 }
 0x1c0   :  { %v362_v9 = vadd.f32 %v361_v4, %v360_v61  ;;  %v367_v12 = vrot.slane %v366_v5, 2  ;;  %v372_v13 = vadd.f32 %v2392_v63, %v371_v7  ;;  %v377_v16 = vrot.slane %v2394_v8, 4 }
 0x1c2   :  { %v363_v19 = vrot.slane %v362_v9, 1  ;;  %v368_v22 = vadd.f32 %v367_v12, %v366_v5  ;;  %v373_v23 = vrot.slane %v372_v13, 2  ;;  %v378_v24 = vadd.f32 %v2394_v8, %v377_v16 }
 0x1c4   :  { %v364_v25 = vadd.f32 %v363_v19, %v362_v9  ;;  %v369_v26 = vrot.slane %v368_v22, 1  ;;  %v374_v27 = vadd.f32 %v373_v23, %v372_v13  ;;  %v379_v28 = vrot.slane %v378_v24, 2 }
 0x1c6   :  { %v370_v29 = vadd.f32 %v369_v26, %v368_v22  ;;  %v375_v30 = vrot.slane %v374_v27, 1  ;;  %v380_v31 = vadd.f32 %v379_v28, %v378_v24  ;;  %2395 = vrcp.f32 %v364_v25 }
 0x1c8   :  { %v376_v32 = vadd.f32 %v375_v30, %v374_v27  ;;  %v381_v33 = vrot.slane %v380_v31, 1  ;;  %2397 = vrcp.f32 %v370_v29 }
 0x1ca   :  { %v382_v34 = vadd.f32 %v381_v33, %v380_v31  ;;  %2399 = vrcp.f32 %v376_v32 }
 0x1cc   :  { %2401 = vrcp.f32 %v382_v34 }
 0x1d3   :  { %v2396_v35 = vpop.eup %2395 }
 0x1d4   :  { %v384_v37 = vmul.f32 %v2396_v35, %v2388_v58 }
 0x1d5   :  { %v2398_v36 = vpop.eup %2397 }
 0x1d6   :  { %v386_v38 = vmul.f32 %v2398_v36, %v2390_v60 }
 0x1d7   :  { %v2400_v39 = vpop.eup %2399 }
 0x1d8   :  { %v388_v40 = vmul.f32 %v2400_v39, %v2392_v63  ;;  %v391_v41 = vadd.f32 %v386_v38, %v384_v37 }
 0x1d9   :  { %v2402_v42 = vpop.eup %2401 }
 0x1da   :  { %v390_v43 = vmul.f32 %v2402_v42, %v2394_v8  ;;  %v392_v44 = vadd.f32 %v391_v41, %v388_v40 }
 0x1dc   :  { %v393_v45 = vadd.f32 %v392_v44, %v390_v43 }
 0x1de   :  { %394 = vadd.xlane.f32.xlu1 %v393_v45 }
 0x267   :  { %v395_v46 = vpop.xlane.xlu1 %394 }
 0x268   :  { %v396_v47 = vadd.f32 1e-06, %v395_v46 }
 0x26a   :  { %2403 = vrcp.f32 %v396_v47 }
 0x277   :  { %v2404_v48 = vpop.eup %2403 }
 0x278   :  { %v399_v49 = vmul.f32 %v2404_v48, %v386_v38  ;;  %v401_v50 = vmul.f32 %v2404_v48, %v390_v43  ;;  %v398_v51 = vmul.f32 %v2404_v48, %v384_v37  ;;  %v400_v52 = vmul.f32 %v2404_v48, %v388_v40 }
 0x27a   :  { %432 = vmatprep.subr.mxu1 %v399_v49  ;;  %502 = vmatprep.subr.mxu0 %v401_v50 }
 0x27b   :  { %433 = vmatpush1.xpose.msra.mxu1 %v398_v51  ;;  %503 = vmatpush1.xpose.msra.mxu0 %v400_v52 }
 0x27c   :  { %625 = vmatprep.subr.mxu1 %v2605_v14  ;;  %696 = vmatprep.subr.mxu0 %v2617_v20 }
 0x27e   :  { %467 = vmatmul.mubr.f32.vlgmr.msra.gmra.mxu1 %v2608_v15  ;;  %537 = vmatmul.mubr.f32.vlgmr.msra.gmra.mxu0 %v2622_v21 }
 0x27f   :  { %626 = vmatpush1.msra.mxu1 %v2608_v15  ;;  %697 = vmatpush1.msra.mxu0 %v2622_v21 }
 0x280   :  { %659 = vmatprep.mubr.f32.mxu1 %v2524_v0  ;;  %730 = vmatprep.mubr.f32.mxu0 %v2524_v0 }
 0x33e   :  { %v468_v53 = vpop.f32.mrf.mxu1  ;;  %v538_v54 = vpop.f32.mrf.mxu0 }
 0x33f   :  { %v539_v55 = vadd.f32 %v538_v54, %v468_v53 }
 0x340   :  { %v470_v56 = vpop.f32.mrf.mxu1  ;;  %v540_v57 = vpop.f32.mrf.mxu0 }
 0x341   :  { %v542_v58 = vmul.f32 %v539_v55, %v539_v55 }
 0x343   :  { %v543_v59 = vsel %vm177_vm1, %v542_v58, 0.0 }
 0x344   :  { %v544_v60 = vrot.slane %v543_v59, 4 }
 0x346   :  { %v545_v61 = vadd.f32 %v544_v60, %v543_v59 }
 0x348   :  { %v546_v62 = vrot.slane %v545_v61, 2 }
 0x34a   :  { %v547_v63 = vadd.f32 %v546_v62, %v545_v61 }
 0x34c   :  { %v548_v4 = vrot.slane %v547_v63, 1 }
 0x34e   :  { %v549_v5 = vadd.f32 %v548_v4, %v547_v63 }
 0x350   :  { %2405 = vrsqrt.f32 %v549_v5  ;;  %vm552_vm2 = vcmp.eq.f32.partialorder %v549_v5, inf  ;;  %v555_v9 = vand.u32 2147483648, %v549_v5  ;;  %vm554_vm3 = vcmp.eq.f32.partialorder %v549_v5, 0.0 }
 0x35d   :  { %v2406_v7 = vpop.eup %2405 }
 0x35e   :  { %v551_v8 = vmul.f32 %v2406_v7, %v549_v5 }
 0x360   :  { %v553_v12 = vsel %vm552_vm2, %v549_v5, %v551_v8 }
 0x361   :  { %v556_v13 = vsel %vm554_vm3, %v555_v9, %v553_v12 }
 0x362   :  { %v557_v16 = vadd.f32 1e-06, %v556_v13 }
 0x364   :  { %2407 = vrcp.f32 %v557_v16 }
 0x371   :  { %v2408_v19 = vpop.eup %2407 }
 0x372   :  { %v559_v22 = vmul.f32 %v2408_v19, %v539_v55 }
 0x374   :  { %560 = vxpose.xlu0.b32.start.end [1/1] (short) (narrow) %v559_v22, 8 }
 0x3f0   :  { %v576_v23 = vpop.trf.xlu0 }
 0x3f1   :  { %2363 = vmatmul.mubr.msk.f32.vlgmr.msra.gmra.mxu1 %vm177_vm1, %v576_v23  ;;  %2364 = vmatmul.mubr.msk.f32.vlgmr.msra.gmra.mxu0 %vm177_vm1, %v576_v23 }
 0x3f2   :  { %880 = vmatprep.mubr.f32.mxu1 %v2605_v14  ;;  %950 = vmatprep.mubr.f32.mxu0 %v2617_v20 }
 0x4b1   :  { %v661_v24 = vpop.f32.mrf.mxu1  ;;  %v732_v25 = vpop.f32.mrf.mxu0 }
 0x4b2   :  { %v737_v26 = vrot.slane %v661_v24, 4  ;;  %v749_v27 = vrot.slane %v732_v25, 4 }
 0x4b3   :  { %v663_v28 = vpop.f32.mrf.mxu1  ;;  %v734_v29 = vpop.f32.mrf.mxu0 }
 0x4b4   :  { %v738_v30 = vmax.f32 %v661_v24, %v737_v26  ;;  %v750_v31 = vmax.f32 %v732_v25, %v749_v27  ;;  %v743_v32 = vrot.slane %v663_v28, 4  ;;  %v755_v33 = vrot.slane %v734_v29, 4 }
 0x4b6   :  { %v739_v34 = vrot.slane %v738_v30, 2  ;;  %v751_v35 = vrot.slane %v750_v31, 2  ;;  %v744_v36 = vmax.f32 %v663_v28, %v743_v32  ;;  %v756_v37 = vmax.f32 %v734_v29, %v755_v33 }
 0x4b8   :  { %v740_v38 = vmax.f32 %v738_v30, %v739_v34  ;;  %v752_v39 = vmax.f32 %v750_v31, %v751_v35  ;;  %v745_v40 = vrot.slane %v744_v36, 2  ;;  %v757_v14 = vrot.slane %v756_v37, 2 }
 0x4ba   :  { %v741_v41 = vrot.slane %v740_v38, 1  ;;  %v753_v20 = vrot.slane %v752_v39, 1  ;;  %v746_v42 = vmax.f32 %v744_v36, %v745_v40  ;;  %v758_v43 = vmax.f32 %v756_v37, %v757_v14 }
 0x4bc   :  { %v742_v44 = vmax.f32 %v740_v38, %v741_v41  ;;  %v754_v45 = vmax.f32 %v752_v39, %v753_v20  ;;  %v747_v46 = vrot.slane %v746_v42, 1  ;;  %v759_v47 = vrot.slane %v758_v43, 1 }
 0x4be   :  { %v761_v48 = vsub.f32 %v661_v24, %v742_v44  ;;  %v763_v49 = vsub.f32 %v732_v25, %v754_v45  ;;  %v748_v50 = vmax.f32 %v746_v42, %v747_v46  ;;  %v760_v51 = vmax.f32 %v758_v43, %v759_v47 }
 0x4c0   :  { %v765_v52 = vmul.f32 1.442695, %v761_v48  ;;  %v769_v53 = vmul.f32 1.442695, %v763_v49  ;;  %v762_v54 = vsub.f32 %v663_v28, %v748_v50  ;;  %v764_v55 = vsub.f32 %v734_v29, %v760_v51  ;;  %v2647_v51 = vld [vmem:[#allocation2 + $0x38] sm:$0xff] }
 0x4c2   :  { %2409 = vpow2.f32 %v765_v52  ;;  %v767_v56 = vmul.f32 1.442695, %v762_v54  ;;  %v771_v57 = vmul.f32 1.442695, %v764_v55 }
 0x4c3   :  { %2411 = vpow2.f32 %v769_v53 }
 0x4c4   :  { %2413 = vpow2.f32 %v767_v56 }
 0x4c5   :  { %2415 = vpow2.f32 %v771_v57 }
 0x4cf   :  { %v2410_v58 = vpop.eup %2409 }
 0x4d0   :  { %v2412_v59 = vpop.eup %2411  ;;  %v773_v60 = vrot.slane %v2410_v58, 4 }
 0x4d1   :  { %v2414_v61 = vpop.eup %2413  ;;  %v785_v62 = vrot.slane %v2412_v59, 4 }
 0x4d2   :  { %v2416_v63 = vpop.eup %2415  ;;  %v774_v4 = vadd.f32 %v2410_v58, %v773_v60  ;;  %v779_v5 = vrot.slane %v2414_v61, 4 }
 0x4d3   :  { %v786_v7 = vadd.f32 %v2412_v59, %v785_v62  ;;  %v791_v8 = vrot.slane %v2416_v63, 4 }
 0x4d4   :  { %v775_v9 = vrot.slane %v774_v4, 2  ;;  %v780_v12 = vadd.f32 %v2414_v61, %v779_v5 }
 0x4d5   :  { %v787_v13 = vrot.slane %v786_v7, 2  ;;  %v792_v16 = vadd.f32 %v2416_v63, %v791_v8 }
 0x4d6   :  { %v776_v19 = vadd.f32 %v775_v9, %v774_v4  ;;  %v781_v22 = vrot.slane %v780_v12, 2 }
 0x4d7   :  { %v788_v23 = vadd.f32 %v787_v13, %v786_v7  ;;  %v793_v24 = vrot.slane %v792_v16, 2 }
 0x4d8   :  { %v777_v25 = vrot.slane %v776_v19, 1  ;;  %v782_v26 = vadd.f32 %v781_v22, %v780_v12  ;;  %v2657_v22 = vld [vmem:[#allocation2 + $0x20] sm:$0xff] }
 0x4d9   :  { %v789_v27 = vrot.slane %v788_v23, 1  ;;  %v794_v28 = vadd.f32 %v793_v24, %v792_v16  ;;  %v2651_v16 = vld [vmem:[#allocation2 + $0x30] sm:$0xff] }
 0x4da   :  { %v778_v29 = vadd.f32 %v777_v25, %v776_v19  ;;  %v783_v30 = vrot.slane %v782_v26, 1  ;;  %v2653_v19 = vld [vmem:[#allocation2 + $0x28] sm:$0xff] }
 0x4db   :  { %v790_v31 = vadd.f32 %v789_v27, %v788_v23  ;;  %v795_v32 = vrot.slane %v794_v28, 1 }
 0x4dc   :  { %v784_v33 = vadd.f32 %v783_v30, %v782_v26  ;;  %2417 = vrcp.f32 %v778_v29 }
 0x4dd   :  { %v796_v34 = vadd.f32 %v795_v32, %v794_v28  ;;  %2419 = vrcp.f32 %v790_v31 }
 0x4de   :  { %2421 = vrcp.f32 %v784_v33 }
 0x4df   :  { %2423 = vrcp.f32 %v796_v34 }
 0x4e9   :  { %v2418_v35 = vpop.eup %2417 }
 0x4ea   :  { %v2420_v36 = vpop.eup %2419  ;;  %v798_v38 = vmul.f32 %v2418_v35, %v2410_v58 }
 0x4eb   :  { %v2422_v37 = vpop.eup %2421  ;;  %v802_v14 = vmul.f32 %v2420_v36, %v2412_v59  ;;  %v2689_v36 = vld [vmem:[%s2780_s3 + $0x8] sm:$0xff] }
 0x4ec   :  { %v800_v39 = vmul.f32 %v2422_v37, %v2414_v61  ;;  %v2424_v40 = vpop.eup %2423 }
 0x4ed   :  { %v804_v20 = vmul.f32 %v2424_v40, %v2416_v63 }
 0x4ee   :  { %v805_v41 = vadd.f32 %v800_v39, %v798_v38 }
 0x4f0   :  { %v806_v42 = vadd.f32 %v805_v41, %v802_v14 }
 0x4f2   :  { %v807_v43 = vadd.f32 %v806_v42, %v804_v20 }
 0x4f4   :  { %808 = vadd.xlane.f32.xlu0 %v807_v43 }
 0x57d   :  { %v809_v44 = vpop.xlane.xlu0 %808 }
 0x57e   :  { %v810_v45 = vadd.f32 1e-06, %v809_v44 }
 0x580   :  { %2425 = vrcp.f32 %v810_v45 }
 0x58d   :  { %v2426_v46 = vpop.eup %2425 }
 0x58e   :  { %v813_v47 = vmul.f32 %v2426_v46, %v800_v39  ;;  %v815_v48 = vmul.f32 %v2426_v46, %v804_v20  ;;  %v812_v49 = vmul.f32 %v2426_v46, %v798_v38  ;;  %v814_v50 = vmul.f32 %v2426_v46, %v802_v14 }
 0x590   :  { %846 = vmatprep.subr.mxu1 %v813_v47  ;;  %916 = vmatprep.subr.mxu0 %v815_v48 }
 0x591   :  { %847 = vmatpush1.xpose.msra.mxu1 %v812_v49  ;;  %917 = vmatpush1.xpose.msra.mxu0 %v814_v50 }
 0x592   :  { %1007 = vmatprep.subr.mxu1 %v800_v39  ;;  %1078 = vmatprep.subr.mxu0 %v804_v20 }
 0x594   :  { %881 = vmatmul.mubr.f32.vlgmr.msra.gmra.mxu1 %v2608_v15  ;;  %951 = vmatmul.mubr.f32.vlgmr.msra.gmra.mxu0 %v2622_v21 }
 0x595   :  { %1008 = vmatpush1.msra.mxu1 %v798_v38  ;;  %1079 = vmatpush1.msra.mxu0 %v802_v14 }
 0x596   :  { %1041 = vmatprep.mubr.f32.mxu1 %v2524_v0  ;;  %1112 = vmatprep.mubr.f32.mxu0 %v2524_v0 }
 0x597   :  { %1261 = vmatprep.subr.mxu0 %v2647_v51 }
 0x654   :  { %v882_v52 = vpop.f32.mrf.mxu1  ;;  %v952_v53 = vpop.f32.mrf.mxu0 }
 0x655   :  { %v953_v54 = vadd.f32 %v952_v53, %v882_v52 }
 0x656   :  { %v884_v55 = vpop.f32.mrf.mxu1  ;;  %v954_v56 = vpop.f32.mrf.mxu0 }
 0x657   :  { %v956_v57 = vmul.f32 %v953_v54, %v953_v54 }
 0x659   :  { %v957_v15 = vsel %vm177_vm1, %v956_v57, 0.0 }
 0x65a   :  { %v958_v58 = vrot.slane %v957_v15, 4 }
 0x65c   :  { %v959_v21 = vadd.f32 %v958_v58, %v957_v15 }
 0x65e   :  { %v960_v59 = vrot.slane %v959_v21, 2 }
 0x660   :  { %v961_v60 = vadd.f32 %v960_v59, %v959_v21 }
 0x662   :  { %v962_v61 = vrot.slane %v961_v60, 1 }
 0x664   :  { %v963_v62 = vadd.f32 %v962_v61, %v961_v60 }
 0x666   :  { %2427 = vrsqrt.f32 %v963_v62  ;;  %vm966_vm4 = vcmp.eq.f32.partialorder %v963_v62, inf  ;;  %v969_v5 = vand.u32 2147483648, %v963_v62  ;;  %vm968_vm5 = vcmp.eq.f32.partialorder %v963_v62, 0.0 }
 0x673   :  { %v2428_v63 = vpop.eup %2427 }
 0x674   :  { %v965_v4 = vmul.f32 %v2428_v63, %v963_v62 }
 0x676   :  { %v967_v7 = vsel %vm966_vm4, %v963_v62, %v965_v4 }
 0x677   :  { %v970_v8 = vsel %vm968_vm5, %v969_v5, %v967_v7 }
 0x678   :  { %v971_v9 = vadd.f32 1e-06, %v970_v8 }
 0x67a   :  { %2429 = vrcp.f32 %v971_v9 }
 0x687   :  { %v2430_v12 = vpop.eup %2429 }
 0x688   :  { %v973_v13 = vmul.f32 %v2430_v12, %v953_v54 }
 0x68a   :  { %2365 = vmatmul.mubr.msk.f32.vlgmr.msra.gmra.mxu1 %vm177_vm1, %v973_v13  ;;  %2366 = vmatmul.mubr.msk.f32.vlgmr.msra.gmra.mxu0 %vm177_vm1, %v973_v13 }
 0x68b   :  { %1262 = vmatpush1.msra.mxu0 %v2651_v16  ;;  %1297 = vmatprep.mubr.f32.mxu0 %v2524_v0 }
 0x68c   :  { %1263 = vmatprep.subr.mxu0 %v2653_v19  ;;  %1203 = vmatprep.mubr.f32.mxu1 %v2524_v0 }
 0x68d   :  { %1264 = vmatpush1.msra.mxu0 %v2657_v22 }
 0x68e   :  { %2369 = vmatmul.mubr.msk.f32.vlgmr.msra.gmra.mxu0 %vm61_vm0, %v2580_v6  ;;  %v2673_v6 = vld [vmem:[%s2780_s3] sm:$0xff] }
 0x68f   :  { %1303 = vmatprep.mubr.f32.mxu0 %v2524_v0 }
 0x692   :  { %2370 = vmatmul.mubr.msk.f32.gmra.mxu0 %vm61_vm0, %v2597_v10 }
 0x693   :  { %1445 = vmatprep.mubr.f32.mxu0 %v2524_v0 }
 0x74a   :  { %v1043_v23 = vpop.f32.mrf.mxu1  ;;  %v1114_v24 = vpop.f32.mrf.mxu0 }
 0x74b   :  { %v1121_v28 = vmax.f32 %v1114_v24, 0.0  ;;  %v1119_v31 = vmax.f32 %v1043_v23, 0.0 }
 0x74c   :  { %v1045_v25 = vpop.f32.mrf.mxu1  ;;  %v1116_v26 = vpop.f32.mrf.mxu0 }
 0x74d   :  { %v1122_v27 = vmax.f32 %v1116_v26, 0.0  ;;  %v1120_v30 = vmax.f32 %v1045_v25, 0.0 }
 0x74e   :  { %v1299_v29 = vpop.f32.mrf.mxu0 }
 0x74f   :  { %1167 = vmatprep.subr.mxu1 %v1122_v27  ;;  %v2679_v33 = vadd.f32 %v1299_v29, %v2602_v11 }
 0x750   :  { %1168 = vmatpush1.msra.mxu1 %v1121_v28  ;;  %v1301_v32 = vpop.f32.mrf.mxu0 }
 0x751   :  { %v2676_v10 = vadd.f32 %v1301_v32, %v2602_v11  ;;  %1169 = vmatprep.subr.mxu1 %v1120_v30 }
 0x752   :  { %1170 = vmatpush1.msra.mxu1 %v1119_v31  ;;  %v1305_v34 = vpop.f32.mrf.mxu0 }
 0x753   :  { %2367 = vmatmul.mubr.msk.f32.vlgmr.msra.gmra.mxu1 %vm61_vm0, %v2673_v6  ;;  %1340 = vmatprep.subr.mxu1 %v2676_v10  ;;  %v2695_v37 = vadd.f32 %v1305_v34, %v2613_v18 }
 0x754   :  { %v1307_v35 = vpop.f32.mrf.mxu0  ;;  %1341 = vmatpush1.msra.mxu1 %v2679_v33  ;;  %1209 = vmatprep.mubr.f32.mxu1 %v2524_v0 }
 0x755   :  { %v2692_v11 = vadd.f32 %v1307_v35, %v2613_v18 }
 0x757   :  { %2368 = vmatmul.mubr.msk.f32.gmra.mxu1 %vm61_vm0, %v2689_v36  ;;  %1411 = vmatprep.subr.mxu0 %v2692_v11 }
 0x758   :  { %1412 = vmatpush1.msra.mxu0 %v2695_v37  ;;  %1374 = vmatprep.mubr.f32.mxu1 %v2524_v0 }
 0x759   :  { %2372 = vmatmul.mubr.msk.f32.vlgmr.msra.gmra.mxu0 %vm177_vm1, %v2610_v17 }
 0x75a   :  { %1665 = vmatprep.mubr.f32.mxu0 %v2692_v11 }
 0x75b   :  { %2371 = vmatmul.mubr.msk.f32.vlgmr.msra.gmra.mxu1 %vm177_vm1, %v2610_v17 }
 0x75c   :  { %1595 = vmatprep.mubr.f32.mxu1 %v2676_v10 }
 0x813   :  { %v2708_v18 = vpop.f32.mrf.mxu1 }
 0x815   :  { %v2710_v38 = vpop.f32.mrf.mxu1 }
 0x817   :  { %v2712_v39 = vpop.f32.mrf.mxu1 }
 0x819   :  { %v2714_v40 = vpop.f32.mrf.mxu1  ;;  %v1447_v14 = vpop.f32.mrf.mxu0 }
 0x81a   :  { %v1464_v41 = vrot.slane %v1447_v14, 4 }
 0x81b   :  { %v1376_v20 = vpop.f32.mrf.mxu1  ;;  %v1449_v42 = vpop.f32.mrf.mxu0 }
 0x81c   :  { %v1465_v43 = vmax.f32 %v1447_v14, %v1464_v41  ;;  %v1452_v44 = vrot.slane %v1376_v20, 4  ;;  %v1470_v45 = vrot.slane %v1449_v42, 4 }
 0x81d   :  { %v1378_v46 = vpop.f32.mrf.mxu1 }
 0x81e   :  { %v1466_v47 = vrot.slane %v1465_v43, 2  ;;  %v1453_v17 = vmax.f32 %v1376_v20, %v1452_v44  ;;  %v1471_v48 = vmax.f32 %v1449_v42, %v1470_v45  ;;  %v1458_v49 = vrot.slane %v1378_v46, 4 }
 0x820   :  { %v1467_v50 = vmax.f32 %v1465_v43, %v1466_v47  ;;  %v1454_v52 = vrot.slane %v1453_v17, 2  ;;  %v1472_v53 = vrot.slane %v1471_v48, 2  ;;  %v1459_v54 = vmax.f32 %v1378_v46, %v1458_v49 }
 0x822   :  { %v1468_v55 = vrot.slane %v1467_v50, 1  ;;  %v1455_v56 = vmax.f32 %v1453_v17, %v1454_v52  ;;  %v1473_v57 = vmax.f32 %v1471_v48, %v1472_v53  ;;  %v1460_v15 = vrot.slane %v1459_v54, 2 }
 0x824   :  { %v1469_v58 = vmax.f32 %v1467_v50, %v1468_v55  ;;  %v1456_v21 = vrot.slane %v1455_v56, 1  ;;  %v1474_v59 = vrot.slane %v1473_v57, 1  ;;  %v1461_v60 = vmax.f32 %v1459_v54, %v1460_v15 }
 0x826   :  { %v1478_v61 = vsub.f32 %v1447_v14, %v1469_v58  ;;  %v1457_v62 = vmax.f32 %v1455_v56, %v1456_v21  ;;  %v1475_v63 = vmax.f32 %v1473_v57, %v1474_v59  ;;  %v1462_v4 = vrot.slane %v1461_v60, 1 }
 0x828   :  { %v1484_v5 = vmul.f32 1.442695, %v1478_v61  ;;  %v1476_v7 = vsub.f32 %v1376_v20, %v1457_v62  ;;  %v1479_v8 = vsub.f32 %v1449_v42, %v1475_v63  ;;  %v1463_v9 = vmax.f32 %v1461_v60, %v1462_v4 }
 0x82a   :  { %2431 = vpow2.f32 %v1484_v5  ;;  %v1480_v12 = vmul.f32 1.442695, %v1476_v7  ;;  %v1486_v13 = vmul.f32 1.442695, %v1479_v8  ;;  %v1477_v23 = vsub.f32 %v1378_v46, %v1463_v9 }
 0x82c   :  { %2433 = vpow2.f32 %v1480_v12  ;;  %v1482_v24 = vmul.f32 1.442695, %v1477_v23 }
 0x82d   :  { %2435 = vpow2.f32 %v1486_v13 }
 0x82e   :  { %2437 = vpow2.f32 %v1482_v24 }
 0x837   :  { %v2432_v25 = vpop.eup %2431 }
 0x838   :  { %v1500_v26 = vrot.slane %v2432_v25, 4 }
 0x839   :  { %v2434_v27 = vpop.eup %2433 }
 0x83a   :  { %v2436_v28 = vpop.eup %2435  ;;  %v1488_v29 = vrot.slane %v2434_v27, 4  ;;  %v1501_v30 = vadd.f32 %v2432_v25, %v1500_v26 }
 0x83b   :  { %v2438_v31 = vpop.eup %2437  ;;  %v1506_v32 = vrot.slane %v2436_v28, 4 }
 0x83c   :  { %v1489_v34 = vadd.f32 %v2434_v27, %v1488_v29  ;;  %v1494_v35 = vrot.slane %v2438_v31, 4  ;;  %v1502_v14 = vrot.slane %v1501_v30, 2 }
 0x83d   :  { %v1507_v41 = vadd.f32 %v2436_v28, %v1506_v32 }
 0x83e   :  { %v1490_v20 = vrot.slane %v1489_v34, 2  ;;  %v1495_v42 = vadd.f32 %v2438_v31, %v1494_v35  ;;  %v1503_v43 = vadd.f32 %v1502_v14, %v1501_v30 }
 0x83f   :  { %v1508_v44 = vrot.slane %v1507_v41, 2 }
 0x840   :  { %v1491_v45 = vadd.f32 %v1490_v20, %v1489_v34  ;;  %v1496_v46 = vrot.slane %v1495_v42, 2  ;;  %v1504_v47 = vrot.slane %v1503_v43, 1 }
 0x841   :  { %v1509_v17 = vadd.f32 %v1508_v44, %v1507_v41 }
 0x842   :  { %v1492_v48 = vrot.slane %v1491_v45, 1  ;;  %v1497_v49 = vadd.f32 %v1496_v46, %v1495_v42  ;;  %v1505_v50 = vadd.f32 %v1504_v47, %v1503_v43 }
 0x843   :  { %v1510_v52 = vrot.slane %v1509_v17, 1 }
 0x844   :  { %v1493_v53 = vadd.f32 %v1492_v48, %v1491_v45  ;;  %v1498_v54 = vrot.slane %v1497_v49, 1 }
 0x845   :  { %v1511_v56 = vadd.f32 %v1510_v52, %v1509_v17 }
 0x846   :  { %v1499_v55 = vadd.f32 %v1498_v54, %v1497_v49  ;;  %2439 = vrcp.f32 %v1493_v53  ;;  %v45_v49 = vld [vmem:[%s2781_s4 + $0x8] sm:$0xff] }
 0x847   :  { %2441 = vrcp.f32 %v1505_v50 }
 0x848   :  { %2443 = vrcp.f32 %v1499_v55 }
 0x849   :  { %2445 = vrcp.f32 %v1511_v56 }
 0x853   :  { %v2440_v57 = vpop.eup %2439 }
 0x854   :  { %v2442_v15 = vpop.eup %2441  ;;  %v1513_v21 = vmul.f32 %v2440_v57, %v2434_v27 }
 0x855   :  { %v2444_v58 = vpop.eup %2443  ;;  %v1517_v61 = vmul.f32 %v2442_v15, %v2432_v25 }
 0x856   :  { %v1515_v59 = vmul.f32 %v2444_v58, %v2438_v31  ;;  %v2446_v60 = vpop.eup %2445 }
 0x857   :  { %v1519_v63 = vmul.f32 %v2446_v60, %v2436_v28 }
 0x858   :  { %v1520_v62 = vadd.f32 %v1515_v59, %v1513_v21 }
 0x85a   :  { %v1521_v4 = vadd.f32 %v1520_v62, %v1517_v61 }
 0x85c   :  { %v1522_v5 = vadd.f32 %v1521_v4, %v1519_v63 }
 0x85e   :  { %1523 = vadd.xlane.f32.xlu1 %v1522_v5 }
 0x8e7   :  { %v1524_v7 = vpop.xlane.xlu1 %1523 }
 0x8e8   :  { %v1525_v8 = vadd.f32 1e-06, %v1524_v7 }
 0x8ea   :  { %2447 = vrcp.f32 %v1525_v8 }
 0x8f7   :  { %v2448_v9 = vpop.eup %2447 }
 0x8f8   :  { %v1528_v12 = vmul.f32 %v2448_v9, %v1515_v59  ;;  %v1530_v13 = vmul.f32 %v2448_v9, %v1519_v63  ;;  %v1527_v23 = vmul.f32 %v2448_v9, %v1513_v21  ;;  %v1529_v24 = vmul.f32 %v2448_v9, %v1517_v61 }
 0x8fa   :  { %1561 = vmatprep.subr.mxu1 %v1528_v12  ;;  %1631 = vmatprep.subr.mxu0 %v1530_v13 }
 0x8fb   :  { %1562 = vmatpush1.xpose.msra.mxu1 %v1527_v23  ;;  %1632 = vmatpush1.xpose.msra.mxu0 %v1529_v24 }
 0x8fc   :  { %1754 = vmatprep.subr.mxu1 %v2676_v10  ;;  %1825 = vmatprep.subr.mxu0 %v2692_v11 }
 0x8fe   :  { %1596 = vmatmul.mubr.f32.vlgmr.msra.gmra.mxu1 %v2679_v33  ;;  %1666 = vmatmul.mubr.f32.vlgmr.msra.gmra.mxu0 %v2695_v37 }
 0x8ff   :  { %1755 = vmatpush1.msra.mxu1 %v2679_v33  ;;  %1826 = vmatpush1.msra.mxu0 %v2695_v37 }
 0x900   :  { %1788 = vmatprep.mubr.f32.mxu1 %v2524_v0  ;;  %1859 = vmatprep.mubr.f32.mxu0 %v2524_v0 }
 0x9be   :  { %v1597_v25 = vpop.f32.mrf.mxu1  ;;  %v1667_v26 = vpop.f32.mrf.mxu0 }
 0x9bf   :  { %v1668_v27 = vadd.f32 %v1667_v26, %v1597_v25 }
 0x9c0   :  { %v1599_v28 = vpop.f32.mrf.mxu1  ;;  %v1669_v29 = vpop.f32.mrf.mxu0 }
 0x9c1   :  { %v1671_v30 = vmul.f32 %v1668_v27, %v1668_v27 }
 0x9c3   :  { %v1672_v31 = vsel %vm177_vm1, %v1671_v30, 0.0 }
 0x9c4   :  { %v1673_v32 = vrot.slane %v1672_v31, 4 }
 0x9c6   :  { %v1674_v34 = vadd.f32 %v1673_v32, %v1672_v31 }
 0x9c8   :  { %v1675_v35 = vrot.slane %v1674_v34, 2 }
 0x9ca   :  { %v1676_v14 = vadd.f32 %v1675_v35, %v1674_v34 }
 0x9cc   :  { %v1677_v41 = vrot.slane %v1676_v14, 1 }
 0x9ce   :  { %v1678_v20 = vadd.f32 %v1677_v41, %v1676_v14 }
 0x9d0   :  { %2449 = vrsqrt.f32 %v1678_v20  ;;  %vm1681_vm6 = vcmp.eq.f32.partialorder %v1678_v20, inf  ;;  %v1684_v44 = vand.u32 2147483648, %v1678_v20  ;;  %vm1683_vm7 = vcmp.eq.f32.partialorder %v1678_v20, 0.0 }
 0x9dd   :  { %v2450_v42 = vpop.eup %2449 }
 0x9de   :  { %v1680_v43 = vmul.f32 %v2450_v42, %v1678_v20 }
 0x9e0   :  { %v1682_v45 = vsel %vm1681_vm6, %v1678_v20, %v1680_v43 }
 0x9e1   :  { %v1685_v46 = vsel %vm1683_vm7, %v1684_v44, %v1682_v45 }
 0x9e2   :  { %v1686_v47 = vadd.f32 1e-06, %v1685_v46 }
 0x9e4   :  { %2451 = vrcp.f32 %v1686_v47 }
 0x9f1   :  { %v2452_v17 = vpop.eup %2451 }
 0x9f2   :  { %v1688_v48 = vmul.f32 %v2452_v17, %v1668_v27 }
 0x9f4   :  { %1689 = vxpose.xlu1.b32.start.end [1/1] (short) (narrow) %v1688_v48, 8 }
 0xa12   :  { %2386 = vset.pattern.permute.xlu1 %v2525_v1 }
 0xa13   :  { %1130 = vperm.xlu1 %2386, %v45_v49  }
 0xa70   :  { %v1705_v50 = vpop.trf.xlu1 }
 0xa71   :  { %2373 = vmatmul.mubr.msk.f32.vlgmr.msra.gmra.mxu1 %vm177_vm1, %v1705_v50  ;;  %2374 = vmatmul.mubr.msk.f32.vlgmr.msra.gmra.mxu0 %vm177_vm1, %v1705_v50 }
 0xa72   :  { %2009 = vmatprep.mubr.f32.mxu1 %v2676_v10  ;;  %2079 = vmatprep.mubr.f32.mxu0 %v2692_v11 }
 0xa8e   :  { %v2733_v52 = vpop.permute.xlu1 %1130 }
 0xa8f   :  { %v1212_v53 = vadd.f32 %v2712_v39, %v2733_v52  ;;  %v1214_v54 = vadd.f32 %v2714_v40, %v2733_v52 }
 0xa91   :  { %v1218_v1 = vadd.f32 %v1212_v53, %v2573_v3  ;;  %v1219_v55 = vadd.f32 %v1214_v54, %v2571_v2 }
 0xa93   :  { %v1222_v56 = vmax.f32 %v1218_v1, 0.0  ;;  %v1223_v57 = vmax.f32 %v1219_v55, 0.0 }
 0xa95   :  { %1226 = vst [vmem:[#allocation5 + $0x10] sm:$0xff] %v1222_v56  ;;  %1227 = vst [vmem:[#allocation5 + $0x18] sm:$0xff] %v1223_v57 }
 0xb31   :  { %v1790_v15 = vpop.f32.mrf.mxu1  ;;  %v1861_v10 = vpop.f32.mrf.mxu0 }
 0xb32   :  { %v1866_v58 = vrot.slane %v1790_v15, 4  ;;  %v1878_v11 = vrot.slane %v1861_v10, 4 }
 0xb33   :  { %v1792_v21 = vpop.f32.mrf.mxu1  ;;  %v1863_v59 = vpop.f32.mrf.mxu0 }
 0xb34   :  { %v1867_v60 = vmax.f32 %v1790_v15, %v1866_v58  ;;  %v1879_v61 = vmax.f32 %v1861_v10, %v1878_v11  ;;  %v1872_v39 = vrot.slane %v1792_v21, 4  ;;  %v1884_v62 = vrot.slane %v1863_v59, 4 }
 0xb36   :  { %v1868_v63 = vrot.slane %v1867_v60, 2  ;;  %v1880_v40 = vrot.slane %v1879_v61, 2  ;;  %v1873_v4 = vmax.f32 %v1792_v21, %v1872_v39  ;;  %v1885_v3 = vmax.f32 %v1863_v59, %v1884_v62 }
 0xb38   :  { %v1869_v5 = vmax.f32 %v1867_v60, %v1868_v63  ;;  %v1881_v2 = vmax.f32 %v1879_v61, %v1880_v40  ;;  %v1874_v7 = vrot.slane %v1873_v4, 2  ;;  %v1886_v8 = vrot.slane %v1885_v3, 2 }
 0xb3a   :  { %v1870_v9 = vrot.slane %v1869_v5, 1  ;;  %v1882_v12 = vrot.slane %v1881_v2, 1  ;;  %v1875_v13 = vmax.f32 %v1873_v4, %v1874_v7  ;;  %v1887_v23 = vmax.f32 %v1885_v3, %v1886_v8 }
 0xb3c   :  { %v1871_v24 = vmax.f32 %v1869_v5, %v1870_v9  ;;  %v1883_v25 = vmax.f32 %v1881_v2, %v1882_v12  ;;  %v1876_v26 = vrot.slane %v1875_v13, 1  ;;  %v1888_v27 = vrot.slane %v1887_v23, 1 }
 0xb3e   :  { %v1890_v28 = vsub.f32 %v1790_v15, %v1871_v24  ;;  %v1892_v29 = vsub.f32 %v1861_v10, %v1883_v25  ;;  %v1877_v30 = vmax.f32 %v1875_v13, %v1876_v26  ;;  %v1889_v31 = vmax.f32 %v1887_v23, %v1888_v27  ;;  %v44_v25 = vld [vmem:[%s2781_s4] sm:$0xff]  ;;  %s2526_s4 = smov [#allocation5]  }
 0xb3f   :  { %s2347_s17 = sshll.u32 %s2526_s4, 4  ;;  %s2348_s17 = int_to_ptr.vmem [resolvable:$true] %s2347_s17 }
 0xb40   :  { %v1894_v32 = vmul.f32 1.442695, %v1890_v28  ;;  %v1898_v34 = vmul.f32 1.442695, %v1892_v29  ;;  %v1891_v35 = vsub.f32 %v1792_v21, %v1877_v30  ;;  %v1893_v14 = vsub.f32 %v1863_v59, %v1889_v31  ;;  %v2475_v31 = vld [vmem:[#allocation2] sm:$0xff]  ;;  %s2497_s18 = scalar_lea.vmem %s2348_s17, 1024  ;;  %p2502_p6 = scmp.lt.s32.totalorder %s2348_s17, %s2348_s17 }
 0xb41   :  { %p2498_p5 = scmp.ne.s32.totalorder %s2348_s17, %s2497_s18  ;;  %p2503_p7 = scmp.lt.s32.totalorder %s2497_s18, %s2497_s18 }
 0xb42   :  { %2453 = vpow2.f32 %v1894_v32  ;;  %v1896_v41 = vmul.f32 1.442695, %v1891_v35  ;;  %v1900_v20 = vmul.f32 1.442695, %v1893_v14 }
 0xb43   :  { %2455 = vpow2.f32 %v1898_v34  ;;  %v2476_v34 = vld [vmem:[#allocation2 + $0x8] sm:$0xff]  ;;  %p2504_p8 = por %p2503_p7, %p2502_p6 }
 0xb44   :  { %2457 = vpow2.f32 %v1896_v41 }
 0xb45   :  { %2459 = vpow2.f32 %v1900_v20  ;;  %p2505_p9 = pnand %p2504_p8, %p2498_p5 }
 0xb4f   :  { %v2454_v42 = vpop.eup %2453 }
 0xb50   :  { %v2456_v43 = vpop.eup %2455  ;;  %v1902_v44 = vrot.slane %v2454_v42, 4 }
 0xb51   :  { %v2458_v45 = vpop.eup %2457  ;;  %v1914_v46 = vrot.slane %v2456_v43, 4 }
 0xb52   :  { %v2460_v47 = vpop.eup %2459  ;;  %v1903_v17 = vadd.f32 %v2454_v42, %v1902_v44  ;;  %v1908_v48 = vrot.slane %v2458_v45, 4 }
 0xb53   :  { %v1915_v49 = vadd.f32 %v2456_v43, %v1914_v46  ;;  %v1920_v50 = vrot.slane %v2460_v47, 4 }
 0xb54   :  { %v1904_v53 = vrot.slane %v1903_v17, 2  ;;  %v1909_v54 = vadd.f32 %v2458_v45, %v1908_v48 }
 0xb55   :  { %v1916_v1 = vrot.slane %v1915_v49, 2  ;;  %v1921_v55 = vadd.f32 %v2460_v47, %v1920_v50 }
 0xb56   :  { %v1905_v56 = vadd.f32 %v1904_v53, %v1903_v17  ;;  %v1910_v57 = vrot.slane %v1909_v54, 2 }
 0xb57   :  { %v1917_v15 = vadd.f32 %v1916_v1, %v1915_v49  ;;  %v1922_v10 = vrot.slane %v1921_v55, 2 }
 0xb58   :  { %v1906_v58 = vrot.slane %v1905_v56, 1  ;;  %v1911_v11 = vadd.f32 %v1910_v57, %v1909_v54 }
 0xb59   :  { %v1918_v21 = vrot.slane %v1917_v15, 1  ;;  %v1923_v59 = vadd.f32 %v1922_v10, %v1921_v55 }
 0xb5a   :  { %v1907_v60 = vadd.f32 %v1906_v58, %v1905_v56  ;;  %v1912_v61 = vrot.slane %v1911_v11, 1 }
 0xb5b   :  { %v1919_v39 = vadd.f32 %v1918_v21, %v1917_v15  ;;  %v1924_v62 = vrot.slane %v1923_v59, 1 }
 0xb5c   :  { %v1913_v63 = vadd.f32 %v1912_v61, %v1911_v11  ;;  %2461 = vrcp.f32 %v1907_v60 }
 0xb5d   :  { %v1925_v40 = vadd.f32 %v1924_v62, %v1923_v59  ;;  %2463 = vrcp.f32 %v1919_v39 }
 0xb5e   :  { %2465 = vrcp.f32 %v1913_v63 }
 0xb5f   :  { %2467 = vrcp.f32 %v1925_v40 }
 0xb69   :  { %v2462_v4 = vpop.eup %2461 }
 0xb6a   :  { %v2464_v3 = vpop.eup %2463  ;;  %v1927_v2 = vmul.f32 %v2462_v4, %v2454_v42 }
 0xb6b   :  { %v2466_v5 = vpop.eup %2465  ;;  %v1931_v9 = vmul.f32 %v2464_v3, %v2456_v43 }
 0xb6c   :  { %v1929_v7 = vmul.f32 %v2466_v5, %v2458_v45  ;;  %v2468_v8 = vpop.eup %2467 }
 0xb6d   :  { %v1933_v13 = vmul.f32 %v2468_v8, %v2460_v47 }
 0xb6e   :  { %v1934_v12 = vadd.f32 %v1929_v7, %v1927_v2 }
 0xb70   :  { %v1935_v23 = vadd.f32 %v1934_v12, %v1931_v9 }
 0xb72   :  { %v1936_v24 = vadd.f32 %v1935_v23, %v1933_v13 }
 0xb74   :  { %1937 = vadd.xlane.f32.xlu0 %v1936_v24 }
 0xb8a   :  { %1125 = vperm.xlu0 %2385, %v44_v25  }
 0xbfd   :  { %v1938_v26 = vpop.xlane.xlu0 %1937 }
 0xbfe   :  { %v1939_v27 = vadd.f32 1e-06, %v1938_v26 }
 0xc00   :  { %2469 = vrcp.f32 %v1939_v27 }
 0xc05   :  { %v2744_v28 = vpop.permute.xlu0 %1125 }
 0xc06   :  { %v1206_v29 = vadd.f32 %v2708_v18, %v2744_v28  ;;  %v1208_v30 = vadd.f32 %v2710_v38, %v2744_v28 }
 0xc08   :  { %v1216_v32 = vadd.f32 %v2475_v31, %v1206_v29  ;;  %v1217_v35 = vadd.f32 %v2476_v34, %v1208_v30 }
 0xc0a   :  { %v1220_v14 = vmax.f32 %v1216_v32, 0.0  ;;  %v1221_v41 = vmax.f32 %v1217_v35, 0.0 }
 0xc0c   :  { %1224 = vst [vmem:[#allocation5] sm:$0xff] %v1220_v14  ;;  %1225 = vst [vmem:[#allocation5 + $0x8] sm:$0xff] %v1221_v41 }
 0xc0d   :  { %v2470_v20 = vpop.eup %2469 }
 0xc0e   :  { %v1942_v42 = vmul.f32 %v2470_v20, %v1929_v7  ;;  %v1944_v43 = vmul.f32 %v2470_v20, %v1933_v13  ;;  %v1941_v44 = vmul.f32 %v2470_v20, %v1927_v2  ;;  %v1943_v45 = vmul.f32 %v2470_v20, %v1931_v9 }
 0xc10   :  { %1975 = vmatprep.subr.mxu1 %v1942_v42  ;;  %2045 = vmatprep.subr.mxu0 %v1944_v43 }
 0xc11   :  { %1976 = vmatpush1.xpose.msra.mxu1 %v1941_v44  ;;  %2046 = vmatpush1.xpose.msra.mxu0 %v1943_v45 }
 0xc12   :  { %2136 = vmatprep.subr.mxu1 %v1929_v7  ;;  %2207 = vmatprep.subr.mxu0 %v1933_v13 }
 0xc14   :  { %2010 = vmatmul.mubr.f32.vlgmr.msra.gmra.mxu1 %v2679_v33  ;;  %2080 = vmatmul.mubr.f32.vlgmr.msra.gmra.mxu0 %v2695_v37 }
 0xc15   :  { %2137 = vmatpush1.msra.mxu1 %v1927_v2  ;;  %2208 = vmatpush1.msra.mxu0 %v1931_v9 }
 0xc16   :  { %2170 = vmatprep.mubr.f32.mxu1 %v2524_v0  ;;  %2241 = vmatprep.mubr.f32.mxu0 %v2524_v0 }
 0xcd4   :  { %v2011_v18 = vpop.f32.mrf.mxu1  ;;  %v2081_v38 = vpop.f32.mrf.mxu0 }
 0xcd5   :  { %v2082_v46 = vadd.f32 %v2081_v38, %v2011_v18 }
 0xcd6   :  { %v2013_v47 = vpop.f32.mrf.mxu1  ;;  %v2083_v17 = vpop.f32.mrf.mxu0 }
 0xcd7   :  { %v2085_v48 = vmul.f32 %v2082_v46, %v2082_v46 }
 0xcd9   :  { %v2086_v49 = vsel %vm177_vm1, %v2085_v48, 0.0 }
 0xcda   :  { %v2087_v50 = vrot.slane %v2086_v49, 4 }
 0xcdc   :  { %v2088_v53 = vadd.f32 %v2087_v50, %v2086_v49 }
 0xcde   :  { %v2089_v54 = vrot.slane %v2088_v53, 2 }
 0xce0   :  { %v2090_v33 = vadd.f32 %v2089_v54, %v2088_v53 }
 0xce2   :  { %v2091_v1 = vrot.slane %v2090_v33, 1 }
 0xce4   :  { %v2092_v37 = vadd.f32 %v2091_v1, %v2090_v33 }
 0xce6   :  { %2471 = vrsqrt.f32 %v2092_v37  ;;  %vm2095_vm8 = vcmp.eq.f32.partialorder %v2092_v37, inf  ;;  %v2098_v57 = vand.u32 2147483648, %v2092_v37  ;;  %vm2097_vm9 = vcmp.eq.f32.partialorder %v2092_v37, 0.0 }
 0xcf3   :  { %v2472_v55 = vpop.eup %2471 }
 0xcf4   :  { %v2094_v56 = vmul.f32 %v2472_v55, %v2092_v37 }
 0xcf6   :  { %v2096_v15 = vsel %vm2095_vm8, %v2092_v37, %v2094_v56 }
 0xcf7   :  { %v2099_v10 = vsel %vm2097_vm9, %v2098_v57, %v2096_v15 }
 0xcf8   :  { %v2100_v58 = vadd.f32 1e-06, %v2099_v10 }
 0xcfa   :  { %2473 = vrcp.f32 %v2100_v58 }
 0xd07   :  { %v2474_v11 = vpop.eup %2473 }
 0xd08   :  { %v2102_v21 = vmul.f32 %v2474_v11, %v2082_v46 }
 0xd0a   :  { %2375 = vmatmul.mubr.msk.f32.vlgmr.msra.gmra.mxu1 %vm177_vm1, %v2102_v21  ;;  %2376 = vmatmul.mubr.msk.f32.vlgmr.msra.gmra.mxu0 %vm177_vm1, %v2102_v21 }
 0xd0b   :  { %2316 = vmatprep.mubr.f32.mxu1 %v2524_v0 }
 0xdca   :  { %v2172_v59 = vpop.f32.mrf.mxu1  ;;  %v2243_v60 = vpop.f32.mrf.mxu0 }
 0xdcb   :  { %v2250_v63 = vmax.f32 %v2243_v60, 0.0  ;;  %v2248_v4 = vmax.f32 %v2172_v59, 0.0 }
 0xdcc   :  { %v2174_v61 = vpop.f32.mrf.mxu1  ;;  %v2245_v39 = vpop.f32.mrf.mxu0 }
 0xdcd   :  { %v2251_v62 = vmax.f32 %v2245_v39, 0.0  ;;  %v2249_v40 = vmax.f32 %v2174_v61, 0.0 }
 0xdcf   :  { %2280 = vmatprep.subr.mxu1 %v2251_v62 }
 0xdd0   :  { %2281 = vmatpush1.msra.mxu1 %v2250_v63 }
 0xdd1   :  { %2282 = vmatprep.subr.mxu1 %v2249_v40 }
 0xdd2   :  { %2283 = vmatpush1.msra.mxu1 %v2248_v4 }
 0xdd3   :  { %2377 = vmatmul.mubr.msk.f32.vlgmr.msra.gmra.mxu1 %vm61_vm0, %v2673_v6 }
 0xdd4   :  { %2322 = vmatprep.mubr.f32.mxu1 %v2524_v0 }
 0xdd7   :  { %2378 = vmatmul.mubr.msk.f32.gmra.mxu1 %vm61_vm0, %v2689_v36 }
 0xe93   :  { %v2318_v3 = vpop.f32.mrf.mxu1 }
 0xe94   :  { %v2319_v5 = vadd.f32 %v2318_v3, %v2744_v28 }
 0xe95   :  { %v2320_v2 = vpop.f32.mrf.mxu1 }
 0xe96   :  { %v2329_v7 = vadd.f32 %v2319_v5, %v2657_v22  ;;  %v2321_v8 = vadd.f32 %v2320_v2, %v2744_v28 }
 0xe97   :  { %v2324_v9 = vpop.f32.mrf.mxu1 }
 0xe98   :  { %v2333_v12 = vmax.f32 %v2329_v7, 0.0  ;;  %v2330_v13 = vadd.f32 %v2321_v8, %v2653_v19  ;;  %v2325_v23 = vadd.f32 %v2324_v9, %v2733_v52 }
 0xe99   :  { %v2326_v6 = vpop.f32.mrf.mxu1 }
 0xe9a   :  { %2338 = vst [vmem:[#allocation5 + $0x20] sm:$0xff] %v2333_v12  ;;  %v2334_v0 = vmax.f32 %v2330_v13, 0.0  ;;  %v2331_v24 = vadd.f32 %v2325_v23, %v2651_v16  ;;  %v2327_v36 = vadd.f32 %v2326_v6, %v2733_v52 }
 0xe9c   :  { %2339 = vst [vmem:[#allocation5 + $0x28] sm:$0xff] %v2334_v0  ;;  %v2335_v25 = vmax.f32 %v2331_v24, 0.0  ;;  %v2332_v22 = vadd.f32 %v2327_v36, %v2647_v51 }
 0xe9e   :  { %2340 = vst [vmem:[#allocation5 + $0x30] sm:$0xff] %v2335_v25  ;;  %v2336_v26 = vmax.f32 %v2332_v22, 0.0 }
 0xea0   :  { %2341 = vst [vmem:[#allocation5 + $0x38] sm:$0xff] %v2336_v26 }
 0xea1   :  { %2508 = shalt.err (!%p2505_p9)
}
 0xea2   :  { %2353 = dma.vmem_to_hbm [thread:$0]  %s2348_s17, 1024, %s2783_s6, [#allocation4], %s2522_s24, %s2522_s24, %s2523_s25  }
 0xea3   :  { %2519 = dma.done.wait [#allocation4], 1024  }
 0xea4   :  { %2520 = vsyncadd [#allocation4], 4294966272 }
 0xea5   :  { %2357 = vsyncpa [#allocation3], 1 }
 0xea6   :  { %2358 = vsyncpa [#allocation4], 1 }

</bundles_post_ra>
